<compile_context>
chip_gen: v5e
topology: v5e:2x2
jax: 0.10.0
libtpu: 0.0.40
codegen_flags: <defaults>
</compile_context>

<pallas_src>
import functools

import jax
import jax.numpy as jnp
from jax.experimental import pallas as pl
from jax.experimental.pallas import tpu as pltpu


# ---------------------------------------------------------------------------
# Phase 1: stream node tiles, run MLP1 + gating, accumulate per-split [G, D] sums
# ---------------------------------------------------------------------------
def _accumulate_kernel(x_ref, gidx_ref, w1_ref, b1_ref, w2_ref, b2_ref, part_ref,
                       *, n_nodes, tiles_per_split, n_graphs, small_g):
    c = pl.program_id(0)          # node-split axis ("parallel" -> megacore on v7x)
    i = pl.program_id(1)          # tile axis within the split ("arbitrary", carried acc)
    tile_n = x_ref.shape[0]
    D = part_ref.shape[-1]

    # init this split's resident [1, G, D] accumulator block on its first tile
    @pl.when(i == 0)
    def _():
        part_ref[...] = jnp.zeros_like(part_ref)

    # row validity: phantom tiles (index_map clamped onto the last real tile) and the
    # ragged boundary tile both get their out-of-range rows zeroed here.
    global_start = (c * tiles_per_split + i) * tile_n
    row_ids = global_start + jax.lax.broadcasted_iota(jnp.int32, (tile_n, 1), 0)
    row_valid = row_ids < n_nodes                                     # [tile_n, 1] bool

    # ---- MLP1: Linear -> ReLU -> Linear (fused gate|value, 2*D wide), bf16 MXU ----
    x = x_ref[...].astype(jnp.bfloat16)                               # cast after load
    h = jnp.dot(x, w1_ref[...], preferred_element_type=jnp.float32) + b1_ref[...]
    h = jnp.maximum(h, 0.0)                                           # ReLU, f32
    hw2 = jnp.dot(h.astype(jnp.bfloat16), w2_ref[...],
                  preferred_element_type=jnp.float32) + b2_ref[...]   # [tile_n, 2D] f32

    # gated aggregation: sigmoid(x) == 0.5*tanh(0.5*x) + 0.5 (single EUP op)
    gates = 0.5 * jnp.tanh(0.5 * hw2[:, :D]) + 0.5
    ns_g = hw2[:, D:] * gates                                         # [tile_n, D] f32
    ns_g = jnp.where(row_valid, ns_g, 0.0)                            # drop invalid rows

    # ---- unsorted_segment_sum (aggregation_type == 'sum') ----
    if small_g:
        # few output rows: VPU masked select + XLU sublane reduce, no MXU weight-push
        gidx_col = gidx_ref[...]                                      # [tile_n, 1] int32
        rows = []
        for g in range(n_graphs):                                     # static unroll
            m = gidx_col == g
            rows.append(jnp.sum(jnp.where(m, ns_g, 0.0), axis=0, keepdims=True))
        seg = jnp.concatenate(rows, axis=0)                           # [G, D] f32
    else:
        # one-hot matmul path, bf16 operands (0/1 exact), f32 accumulation
        # TODO(synk): chunk the one-hot over the graph axis when n_graphs*tile_n would
        #             not fit VMEM (matters for very large n_graphs on v7x's 64 MiB).
        gidx_row = gidx_ref[...]                                      # [1, tile_n] int32
        graph_iota = jax.lax.broadcasted_iota(jnp.int32, (n_graphs, tile_n), 0)
        onehot = (graph_iota == gidx_row).astype(jnp.bfloat16)        # [G, tile_n]
        seg = jnp.dot(onehot, ns_g.astype(jnp.bfloat16),
                      preferred_element_type=jnp.float32)             # [G, D] f32

    part_ref[...] = part_ref[...] + seg[None, :, :]


# ---------------------------------------------------------------------------
# Phase 2: combine per-split partial sums + MLP2 (Linear -> LeakyReLU -> Linear)
# ---------------------------------------------------------------------------
def _finalize_kernel(part_ref, w3_ref, b3_ref, w4_ref, b4_ref, emb1_ref, out_ref):
    gs = jnp.sum(part_ref[...], axis=0)                               # [G, D] f32
    e1 = jnp.dot(gs, w3_ref[...], preferred_element_type=jnp.float32) + b3_ref[...]
    e1 = jnp.where(e1 > 0, e1, 0.01 * e1)                             # LeakyReLU(0.01)
    emb1_ref[...] = e1                                                # graph_embedding_1
    out_ref[...] = jnp.dot(e1, w4_ref[...],
                           preferred_element_type=jnp.float32) + b4_ref[...]


def _full_spec(arr):
    # whole (small) 2-D array resident in VMEM, same block for every grid step
    return pl.BlockSpec(arr.shape, lambda c, i: (0, 0))


def graph_aggregator_leaky(node_states, graph_idx, n_graphs, params, *,
                           tile_n=4096, n_splits=2, small_g_threshold=8):
    n_nodes, din = node_states.shape
    D = params["w2"].shape[1] // 2      # graph_state_dim
    G1 = params["w3"].shape[1]          # graph_transform_sizes[0]
    G2 = params["w4"].shape[1]          # graph_transform_sizes[-1]

    # TILE_N: multiple of 128 (lane/sublane alignment of the streamed blocks).
    tile_n = max(128, (tile_n // 128) * 128)
    tile_n = min(tile_n, ((n_nodes + 127) // 128) * 128)
    tiles_total = pl.cdiv(n_nodes, tile_n)
    n_splits = max(1, min(n_splits, tiles_total))
    tiles_per_split = pl.cdiv(tiles_total, n_splits)
    last_tile = tiles_total - 1

    small_g = n_graphs <= small_g_threshold

    # bf16 weights for MLP1 (bf16 x bf16 -> f32 on the MXU); biases / MLP2 stay f32.
    w1 = params["w1"].astype(jnp.bfloat16)
    w2 = params["w2"].astype(jnp.bfloat16)
    b1, b2 = params["b1"], params["b2"]

    gidx = graph_idx.astype(jnp.int32)
    # index_map clamps phantom tiles onto the last real tile; their rows are masked
    # out in-kernel, so no wrapper-side padding/cast passes over node_states needed.
    x_spec = pl.BlockSpec(
        (tile_n, din),
        lambda c, i: (jnp.minimum(c * tiles_per_split + i, last_tile), 0))
    if small_g:
        gidx_arr = gidx.reshape(n_nodes, 1)
        gidx_spec = pl.BlockSpec(
            (tile_n, 1),
            lambda c, i: (jnp.minimum(c * tiles_per_split + i, last_tile), 0))
    else:
        gidx_arr = gidx.reshape(1, n_nodes)
        gidx_spec = pl.BlockSpec(
            (1, tile_n),
            lambda c, i: (0, jnp.minimum(c * tiles_per_split + i, last_tile)))

    kernel = functools.partial(
        _accumulate_kernel, n_nodes=n_nodes, tiles_per_split=tiles_per_split,
        n_graphs=n_graphs, small_g=small_g)

    partials = pl.pallas_call(
        kernel,
        out_shape=jax.ShapeDtypeStruct((n_splits, n_graphs, D), jnp.float32),
        grid_spec=pltpu.PrefetchScalarGridSpec(
            num_scalar_prefetch=0,
            grid=(n_splits, tiles_per_split),
            in_specs=[x_spec, gidx_spec,
                      _full_spec(w1), _full_spec(b1),
                      _full_spec(w2), _full_spec(b2)],
            out_specs=pl.BlockSpec((1, n_graphs, D), lambda c, i: (c, 0, 0)),
        ),
        compiler_params=pltpu.CompilerParams(
            # split axis is parallel (dual-TC on v7x); node-tile axis carries the
            # per-split accumulator so it stays arbitrary.
            dimension_semantics=("parallel", "arbitrary"),
            # safe across v5e/v6e (128 MiB) and v7x (64 MiB) for tile_n <= 4096.
            vmem_limit_bytes=48 * 1024 * 1024,
        ),
    )(node_states, gidx_arr, w1, b1, w2, b2)

    # tiny epilogue: combine the per-split partials and run MLP2 (all f32, all resident)
    emb1, out = pl.pallas_call(
        _finalize_kernel,
        out_shape=(jax.ShapeDtypeStruct((n_graphs, G1), jnp.float32),
                   jax.ShapeDtypeStruct((n_graphs, G2), jnp.float32)),
    )(partials, params["w3"], params["b3"], params["w4"], params["b4"])
    return emb1, out


def _init_params(key, node_state_dim, node_hidden_sizes, graph_transform_sizes):
    """Deterministic synthetic init. Weights stored [in, out], biases [1, out].
    w2 is the fused gated layer: columns [:, :D] are the gate, [:, D:] the value."""
    D = node_hidden_sizes[-1]           # graph_state_dim
    h0 = node_hidden_sizes[0]
    gt0, gt1 = graph_transform_sizes
    ks = jax.random.split(key, 8)

    def lin(k, fan_in, fan_out):
        return jax.random.normal(k, (fan_in, fan_out), jnp.float32) / jnp.sqrt(fan_in)

    w1 = lin(ks[0], node_state_dim, h0)
    b1 = jnp.zeros((1, h0), jnp.float32)
    w2 = lin(ks[1], h0, 2 * D)                                   # fused gate|value
    b2 = 0.01 * jax.random.normal(ks[2], (1, 2 * D), jnp.float32)
    w3 = lin(ks[3], D, gt0)
    b3 = 0.01 * jax.random.normal(ks[4], (1, gt0), jnp.float32)
    w4 = lin(ks[5], gt0, gt1)
    b4 = 0.01 * jax.random.normal(ks[6], (1, gt1), jnp.float32)
    return dict(w1=w1, b1=b1, w2=w2, b2=b2, w3=w3, b3=b3, w4=w4, b4=b4)


def _reference(node_states, graph_idx, n_graphs, p):
    """Pure-JAX reference with the same dtype policy (bf16 matmul operands, f32 acc)."""
    x = node_states.astype(jnp.bfloat16)
    w1 = p["w1"].astype(jnp.bfloat16)
    w2 = p["w2"].astype(jnp.bfloat16)
    h = jnp.maximum(jnp.dot(x, w1, preferred_element_type=jnp.float32) + p["b1"], 0.0)
    hw2 = jnp.dot(h.astype(jnp.bfloat16), w2,
                  preferred_element_type=jnp.float32) + p["b2"]
    D = p["w2"].shape[1] // 2
    ns_g = hw2[:, D:] * jax.nn.sigmoid(hw2[:, :D])
    gs = jnp.zeros((n_graphs, D), jnp.float32).at[graph_idx].add(ns_g)
    e1 = gs @ p["w3"] + p["b3"]
    e1 = jnp.where(e1 > 0, e1, 0.01 * e1)
    out = e1 @ p["w4"] + p["b4"]
    return e1, out


if __name__ == "__main__":
    # module config: node_state_dim=16, node_hidden_sizes=[32, 64],
    #                graph_transform_sizes=[64, 64], gated=True, aggregation='sum'
    node_state_dim = 16
    node_hidden_sizes = [32, 64]
    graph_transform_sizes = [64, 64]
    n_nodes, n_graphs = 300, 3

    key = jax.random.PRNGKey(0)
    k_x, k_g, k_p = jax.random.split(key, 3)
    node_states = jax.random.normal(k_x, (n_nodes, node_state_dim), jnp.float32)
    graph_idx = jax.random.randint(k_g, (n_nodes,), 0, n_graphs, dtype=jnp.int32)
    params = _init_params(k_p, node_state_dim, node_hidden_sizes, graph_transform_sizes)

    emb1_ref_, out_ref_ = _reference(node_states, graph_idx, n_graphs, params)

    # small-G (VPU masked-reduce) path: tile_n=128 -> grid (2 splits, 2 tiles); exercises
    # the phantom-tile clamp and the ragged boundary tile masking.
    emb1, out = graph_aggregator_leaky(node_states, graph_idx, n_graphs, params,
                                       tile_n=128)
    jax.block_until_ready((emb1, out))
    assert emb1.shape == (n_graphs, graph_transform_sizes[0])
    assert out.shape == (n_graphs, graph_transform_sizes[-1])
    assert jnp.allclose(emb1, emb1_ref_, atol=1e-2, rtol=1e-2), \
        float(jnp.max(jnp.abs(emb1 - emb1_ref_)))
    assert jnp.allclose(out, out_ref_, atol=1e-2, rtol=1e-2), \
        float(jnp.max(jnp.abs(out - out_ref_)))

    # large-G (bf16 one-hot matmul) path, forced via small_g_threshold=0.
    emb1b, outb = graph_aggregator_leaky(node_states, graph_idx, n_graphs, params,
                                         tile_n=256, small_g_threshold=0)
    jax.block_until_ready((emb1b, outb))
    assert jnp.allclose(emb1b, emb1_ref_, atol=1e-2, rtol=1e-2), \
        float(jnp.max(jnp.abs(emb1b - emb1_ref_)))
    assert jnp.allclose(outb, out_ref_, atol=1e-2, rtol=1e-2), \
        float(jnp.max(jnp.abs(outb - out_ref_)))

    print("KERNEL_OK")
</pallas_src>

<mosaic_0001>
module attributes {stable_mosaic.version = 11 : i64} {
  func.func @_accumulate_kernel(%arg0: i32, %arg1: i32, %arg2: memref<128x16xf32, #tpu.memory_space<vmem>>, %arg3: memref<128x1xi32, #tpu.memory_space<vmem>>, %arg4: memref<16x32xbf16, #tpu.memory_space<vmem>>, %arg5: memref<1x32xf32, #tpu.memory_space<vmem>>, %arg6: memref<32x128xbf16, #tpu.memory_space<vmem>>, %arg7: memref<1x128xf32, #tpu.memory_space<vmem>>, %arg8: memref<1x3x64xf32, #tpu.memory_space<vmem>>) attributes {dimension_semantics = [#tpu.dimension_semantics<parallel>, #tpu.dimension_semantics<arbitrary>], iteration_bounds = array<i64: 2, 2>, scalar_prefetch = 0 : i64, scratch_operands = 0 : i64, tpu.core_type = #tpu.core_type<tc>, window_params = [{transform_indices = @transform_0, window_bounds = array<i64: 128, 16>}, {transform_indices = @transform_1, window_bounds = array<i64: 128, 1>}, {pipeline_mode = #tpu.pipeline_mode<synchronous>, transform_indices = @transform_2, window_bounds = array<i64: 16, 32>}, {pipeline_mode = #tpu.pipeline_mode<synchronous>, transform_indices = @transform_3, window_bounds = array<i64: 1, 32>}, {pipeline_mode = #tpu.pipeline_mode<synchronous>, transform_indices = @transform_4, window_bounds = array<i64: 32, 128>}, {pipeline_mode = #tpu.pipeline_mode<synchronous>, transform_indices = @transform_5, window_bounds = array<i64: 1, 128>}, {transform_indices = @transform_6, window_bounds = array<i64: 1, 3, 64>}]} {
    %c0_i32 = arith.constant 0 : i32
    %0 = arith.cmpi eq, %arg1, %c0_i32 : i32
    %1 = arith.extui %0 : i1 to i32
    %c0_i32_0 = arith.constant 0 : i32
    %2 = arith.cmpi ne, %1, %c0_i32_0 : i32
    scf.if %2 {
      %cst_32 = arith.constant 0.000000e+00 : f32
      %70 = vector.broadcast %cst_32 : f32 to vector<1x3x64xf32>
      %c0_33 = arith.constant 0 : index
      %c0_34 = arith.constant 0 : index
      %c0_35 = arith.constant 0 : index
      %71 = vector.load %arg8[%c0_33, %c0_34, %c0_35] : memref<1x3x64xf32, #tpu.memory_space<vmem>>, vector<1x3x64xf32>
      tpu.vector_store %arg8[%c0_33, %c0_34, %c0_35], %70 {strides = array<i32>} : memref<1x3x64xf32, #tpu.memory_space<vmem>>, vector<1x3x64xf32>,
    } else {
    }
    %c2_i32 = arith.constant 2 : i32
    %3 = arith.muli %arg0, %c2_i32 : i32
    %4 = arith.addi %3, %arg1 : i32
    %c128_i32 = arith.constant 128 : i32
    %5 = arith.muli %4, %c128_i32 : i32
    %6 = tpu.iota {dimensions = array<i32: 0>} : vector<128x1xi32>
    %7 = vector.broadcast %5 : i32 to vector<128x1xi32>
    %8 = arith.addi %7, %6 : vector<128x1xi32>
    %c300_i32 = arith.constant 300 : i32
    %9 = vector.broadcast %c300_i32 : i32 to vector<128x1xi32>
    %10 = arith.cmpi slt, %8, %9 : vector<128x1xi32>
    %c0 = arith.constant 0 : index
    %c0_1 = arith.constant 0 : index
    %11 = vector.load %arg2[%c0, %c0_1] : memref<128x16xf32, #tpu.memory_space<vmem>>, vector<128x16xf32>
    %12 = arith.truncf %11 : vector<128x16xf32> to vector<128x16xbf16>
    %c0_2 = arith.constant 0 : index
    %c0_3 = arith.constant 0 : index
    %13 = vector.load %arg4[%c0_2, %c0_3] : memref<16x32xbf16, #tpu.memory_space<vmem>>, vector<16x32xbf16>
    %cst = arith.constant dense<0.000000e+00> : vector<128x32xf32>
    %14 = tpu.matmul %12, %13, %cst {dimension_numbers = #tpu.dot_dimension_numbers<[1], [0], [0], [1], [0, 0, 1, 1], [], []>} : vector<128x16xbf16>, vector<16x32xbf16>, vector<128x32xf32> -> vector<128x32xf32>
    %c0_4 = arith.constant 0 : index
    %c0_5 = arith.constant 0 : index
    %15 = vector.load %arg5[%c0_4, %c0_5] : memref<1x32xf32, #tpu.memory_space<vmem>>, vector<1x32xf32>
    %16 = vector.broadcast %15 : vector<1x32xf32> to vector<128x32xf32>
    %17 = arith.addf %14, %16 : vector<128x32xf32>
    %cst_6 = arith.constant 0.000000e+00 : f32
    %18 = vector.broadcast %cst_6 : f32 to vector<128x32xf32>
    %19 = arith.maximumf %17, %18 : vector<128x32xf32>
    %20 = arith.truncf %19 : vector<128x32xf32> to vector<128x32xbf16>
    %c0_7 = arith.constant 0 : index
    %c0_8 = arith.constant 0 : index
    %21 = vector.load %arg6[%c0_7, %c0_8] : memref<32x128xbf16, #tpu.memory_space<vmem>>, vector<32x128xbf16>
    %cst_9 = arith.constant dense<0.000000e+00> : vector<128x128xf32>
    %22 = tpu.matmul %20, %21, %cst_9 {dimension_numbers = #tpu.dot_dimension_numbers<[1], [0], [0], [1], [0, 0, 1, 1], [], []>} : vector<128x32xbf16>, vector<32x128xbf16>, vector<128x128xf32> -> vector<128x128xf32>
    %c0_10 = arith.constant 0 : index
    %c0_11 = arith.constant 0 : index
    %23 = vector.load %arg7[%c0_10, %c0_11] : memref<1x128xf32, #tpu.memory_space<vmem>>, vector<1x128xf32>
    %24 = vector.broadcast %23 : vector<1x128xf32> to vector<128x128xf32>
    %25 = arith.addf %22, %24 : vector<128x128xf32>
    %26 = vector.extract_strided_slice %25 {offsets = [0, 0], sizes = [128, 64], strides = [1, 1]} : vector<128x128xf32> to vector<128x64xf32>
    %cst_12 = arith.constant 5.000000e-01 : f32
    %27 = vector.broadcast %cst_12 : f32 to vector<128x64xf32>
    %28 = arith.mulf %27, %26 : vector<128x64xf32>
    %29 = math.tanh %28 : vector<128x64xf32>
    %cst_13 = arith.constant 5.000000e-01 : f32
    %30 = vector.broadcast %cst_13 : f32 to vector<128x64xf32>
    %31 = arith.mulf %30, %29 : vector<128x64xf32>
    %cst_14 = arith.constant 5.000000e-01 : f32
    %32 = vector.broadcast %cst_14 : f32 to vector<128x64xf32>
    %33 = arith.addf %31, %32 : vector<128x64xf32>
    %34 = vector.extract_strided_slice %25 {offsets = [0, 64], sizes = [128, 64], strides = [1, 1]} : vector<128x128xf32> to vector<128x64xf32>
    %35 = arith.mulf %34, %33 : vector<128x64xf32>
    %cst_15 = arith.constant 0.000000e+00 : f32
    %36 = vector.shape_cast %10 : vector<128x1xi1> to vector<128x1xi1>
    %37 = vector.broadcast %36 : vector<128x1xi1> to vector<128x64xi1>
    %38 = vector.broadcast %cst_15 : f32 to vector<128x64xf32>
    %39 = arith.select %37, %35, %38 : vector<128x64xi1>, vector<128x64xf32>
    %c0_16 = arith.constant 0 : index
    %c0_17 = arith.constant 0 : index
    %40 = vector.load %arg3[%c0_16, %c0_17] : memref<128x1xi32, #tpu.memory_space<vmem>>, vector<128x1xi32>
    %c0_i32_18 = arith.constant 0 : i32
    %41 = vector.broadcast %c0_i32_18 : i32 to vector<128x1xi32>
    %42 = arith.cmpi eq, %40, %41 : vector<128x1xi32>
    %cst_19 = arith.constant 0.000000e+00 : f32
    %43 = vector.shape_cast %42 : vector<128x1xi1> to vector<128x1xi1>
    %44 = vector.broadcast %43 : vector<128x1xi1> to vector<128x64xi1>
    %45 = vector.broadcast %cst_19 : f32 to vector<128x64xf32>
    %46 = arith.select %44, %39, %45 : vector<128x64xi1>, vector<128x64xf32>
    %cst_20 = arith.constant dense<0.000000e+00> : vector<64xf32>
    %47 = vector.multi_reduction <add>, %46, %cst_20 [0] : vector<128x64xf32> to vector<64xf32>
    %48 = vector.shape_cast %47 : vector<64xf32> to vector<1x64xf32>
    %c1_i32 = arith.constant 1 : i32
    %49 = vector.broadcast %c1_i32 : i32 to vector<128x1xi32>
    %50 = arith.cmpi eq, %40, %49 : vector<128x1xi32>
    %cst_21 = arith.constant 0.000000e+00 : f32
    %51 = vector.shape_cast %50 : vector<128x1xi1> to vector<128x1xi1>
    %52 = vector.broadcast %51 : vector<128x1xi1> to vector<128x64xi1>
    %53 = vector.broadcast %cst_21 : f32 to vector<128x64xf32>
    %54 = arith.select %52, %39, %53 : vector<128x64xi1>, vector<128x64xf32>
    %cst_22 = arith.constant dense<0.000000e+00> : vector<64xf32>
    %55 = vector.multi_reduction <add>, %54, %cst_22 [0] : vector<128x64xf32> to vector<64xf32>
    %56 = vector.shape_cast %55 : vector<64xf32> to vector<1x64xf32>
    %c2_i32_23 = arith.constant 2 : i32
    %57 = vector.broadcast %c2_i32_23 : i32 to vector<128x1xi32>
    %58 = arith.cmpi eq, %40, %57 : vector<128x1xi32>
    %cst_24 = arith.constant 0.000000e+00 : f32
    %59 = vector.shape_cast %58 : vector<128x1xi1> to vector<128x1xi1>
    %60 = vector.broadcast %59 : vector<128x1xi1> to vector<128x64xi1>
    %61 = vector.broadcast %cst_24 : f32 to vector<128x64xf32>
    %62 = arith.select %60, %39, %61 : vector<128x64xi1>, vector<128x64xf32>
    %cst_25 = arith.constant dense<0.000000e+00> : vector<64xf32>
    %63 = vector.multi_reduction <add>, %62, %cst_25 [0] : vector<128x64xf32> to vector<64xf32>
    %64 = vector.shape_cast %63 : vector<64xf32> to vector<1x64xf32>
    %65 = tpu.concatenate %48, %56, %64 in 0 : vector<1x64xf32>, vector<1x64xf32>, vector<1x64xf32> -> vector<3x64xf32>
    %c0_26 = arith.constant 0 : index
    %c0_27 = arith.constant 0 : index
    %c0_28 = arith.constant 0 : index
    %66 = vector.load %arg8[%c0_26, %c0_27, %c0_28] : memref<1x3x64xf32, #tpu.memory_space<vmem>>, vector<1x3x64xf32>
    %67 = vector.shape_cast %65 : vector<3x64xf32> to vector<1x3x64xf32>
    %68 = arith.addf %66, %67 : vector<1x3x64xf32>
    %c0_29 = arith.constant 0 : index
    %c0_30 = arith.constant 0 : index
    %c0_31 = arith.constant 0 : index
    %69 = vector.load %arg8[%c0_29, %c0_30, %c0_31] : memref<1x3x64xf32, #tpu.memory_space<vmem>>, vector<1x3x64xf32>
    tpu.vector_store %arg8[%c0_29, %c0_30, %c0_31], %68 {strides = array<i32>} : memref<1x3x64xf32, #tpu.memory_space<vmem>>, vector<1x3x64xf32>,
    return
  }
  func.func @transform_0(%arg0: i32, %arg1: i32) -> (i32, i32) {
    %c2_i32 = arith.constant 2 : i32
    %0 = arith.muli %arg0, %c2_i32 : i32
    %1 = arith.addi %0, %arg1 : i32
    %c2_i32_0 = arith.constant 2 : i32
    %2 = arith.minsi %1, %c2_i32_0 : i32
    %c0_i32 = arith.constant 0 : i32
    %c0_i32_1 = arith.constant 0 : i32
    return %2, %c0_i32 : i32, i32
  }
  func.func @transform_1(%arg0: i32, %arg1: i32) -> (i32, i32) {
    %c2_i32 = arith.constant 2 : i32
    %0 = arith.muli %arg0, %c2_i32 : i32
    %1 = arith.addi %0, %arg1 : i32
    %c2_i32_0 = arith.constant 2 : i32
    %2 = arith.minsi %1, %c2_i32_0 : i32
    %c0_i32 = arith.constant 0 : i32
    %c0_i32_1 = arith.constant 0 : i32
    return %2, %c0_i32 : i32, i32
  }
  func.func @transform_2(%arg0: i32, %arg1: i32) -> (i32, i32) {
    %c0_i32 = arith.constant 0 : i32
    %c0_i32_0 = arith.constant 0 : i32
    %c0_i32_1 = arith.constant 0 : i32
    return %c0_i32, %c0_i32_0 : i32, i32
  }
  func.func @transform_3(%arg0: i32, %arg1: i32) -> (i32, i32) {
    %c0_i32 = arith.constant 0 : i32
    %c0_i32_0 = arith.constant 0 : i32
    %c0_i32_1 = arith.constant 0 : i32
    return %c0_i32, %c0_i32_0 : i32, i32
  }
  func.func @transform_4(%arg0: i32, %arg1: i32) -> (i32, i32) {
    %c0_i32 = arith.constant 0 : i32
    %c0_i32_0 = arith.constant 0 : i32
    %c0_i32_1 = arith.constant 0 : i32
    return %c0_i32, %c0_i32_0 : i32, i32
  }
  func.func @transform_5(%arg0: i32, %arg1: i32) -> (i32, i32) {
    %c0_i32 = arith.constant 0 : i32
    %c0_i32_0 = arith.constant 0 : i32
    %c0_i32_1 = arith.constant 0 : i32
    return %c0_i32, %c0_i32_0 : i32, i32
  }
  func.func @transform_6(%arg0: i32, %arg1: i32) -> (i32, i32, i32) {
    %c0_i32 = arith.constant 0 : i32
    %c0_i32_0 = arith.constant 0 : i32
    %c0_i32_1 = arith.constant 0 : i32
    return %arg0, %c0_i32, %c0_i32_0 : i32, i32, i32
  }
}

</mosaic_0001>

<bundles_post_ra>
// kernel: tpu_custom_call.1
= control target key start
LH: loop header
LB: loop body
LE: loop exit
PB: predicated region body
PF: predicated region fallthrough
CT: control target
= control target key end

     0   :  { %s1627_s21 = smov 0   ;;  %s1629_s22 = smov 0   ;;  %s2276_s0 = inlined_call_operand.vmem [shape: f32[300,16], index: 0, kind: input, shape index: {}]   ;;  %s2277_s1 = inlined_call_operand.vmem [shape: s32[300,1], index: 1, kind: input, shape index: {}]   ;;  %s2278_s2 = inlined_call_operand.vmem [shape: bf16[16,32], index: 2, kind: input, shape index: {}]   ;;  %s2279_s3 = inlined_call_operand.vmem [shape: f32[1,32], index: 3, kind: input, shape index: {}]   ;;  %s2280_s4 = inlined_call_operand.vmem [shape: bf16[32,128], index: 4, kind: input, shape index: {}]   ;;  %s2281_s5 = inlined_call_operand.vmem [shape: f32[1,128], index: 5, kind: input, shape index: {}]   ;;  %s2282_s6 = inlined_call_operand.vmem [shape: f32[2,3,64], index: 6, kind: output, shape index: {}]  }
   0x1   :  { %s1631_s23 = smov 0   ;;  %s1633_s24 = smov 0  }
   0x2   :  { %s1635_s25 = smov 0  }
   0x3 LB: > { %s25_s26 = sadd.s32 1, %s1579_s23  ;;  %s28_s27 = sadd.s32 1, %s1583_s24  ;;  %s1587_s25 = sphi %s1635_s25, %s16_s25   ;;  %s1583_s24 = sphi %s1633_s24, %s2322_s24   ;;  %s1579_s23 = sphi %s1631_s23, %s2321_s23   ;;  %s1575_s22 = sphi %s1629_s22, %s2320_s22   ;;  %s1571_s21 = sphi %s1627_s21, %s2319_s21  }
   0x4   : > { %p26_p0 = scmp.ge.s32.totalorder %s25_s26, 2  ;;  %p1422_p1 = scmp.ge.s32.totalorder %s1587_s25, 1 }
   0x5   : > { %p284_p2 = scmp.lt.s32.totalorder %s1587_s25, 5 }
   0x6   : > { %s2324_s26 = smov (%p26_p0, %s25_s26), 0  ;;  %s2326_s27 = smov (!%p26_p0, %s28_s27), %s1583_s24 }
   0x7   : > { %p285_p3 = pnand %p1422_p1, %p284_p2  ;;  %p30_p4 = scmp.ge.s32.totalorder %s2326_s27, 2 }
   0x9   : > { %s2328_s27 = smov (%p30_p4, %s2326_s27), 0  ;;  %288 = sbr.rel (%p285_p3) target bundleno = 675 (0x2a3), region = 44 }
   0xe   : > { %s1423_s28 = sshll.u32 %s1575_s22, 1  ;;  %p378_p5 = scmp.lt.s32.totalorder %s1575_s22, 1 }
   0xf   : > { %s1660_s29 = sadd.s32 %s1571_s21, %s1423_s28  ;;  %p1430_p8 = scmp.ne.s32.totalorder %s1571_s21, 0 }
  0x10   : > { %p336_p6 = scmp.lt.s32.totalorder %s1660_s29, 2  ;;  %s2330_s22 = smov (!%p378_p5, %s1575_s22), 1 }
  0x11   : > { %s1429_s7 = sshll.u32 %s2330_s22, 2 }
  0x12   : > { %s337_s30 = scalar_select %p336_p6, %s1660_s29, 2 }
  0x13   : > { %s1667_s11 = scalar_lea.vmem %s2282_s6, %s1429_s7 }
  0x14   : > { %s1424_s8 = sshll.u32 %s337_s30, 4 }
  0x15   : > { %p343_p7 = scmp.lt.s32.totalorder %s1424_s8, 37  ;;  %386 = sbr.rel (%p1430_p8) target bundleno = 28 (0x1c), region = 48 }
  0x17   : > { %s2332_s8 = smov (!%p343_p7, %s1424_s8), 37 }
  0x18   : > { %s1425_s12 = sshll.u32 %s2332_s8, 3 }
  0x19   : > { %s1672_s15 = scalar_lea.vmem %s2276_s0, %s1425_s12  ;;  %s1677_s18 = scalar_lea.vmem %s2277_s1, %s1425_s12 }
  0x1a   : > { %vm387_vm0 = vcmask 518144   ;;  %v1589_v0 = vmov 0.0  }
  0x1b   : > { %388 = vst.msk [vmem:[%s1667_s11] sm:$0x7] %vm387_vm0, %v1589_v0 }
  0x1c PF: > { %v1463_v1 = vld [vmem:[%s2278_s2] sm:$0xff]  ;;  %v443_v3 = vld [vmem:[%s1672_s15 + $0x8] sm:$0xff]  ;;  %vm478_vm1 = vcmask 130048   ;;  %v444_v5 = vld [vmem:[%s1672_s15 + $0x10] sm:$0xff]  ;;  %v2283_v27 = vmov 0   ;;  %vm596_vm12 = vcmask 261120  }
  0x1d   : > { %v442_v2 = vld [vmem:[%s1672_s15] sm:$0xff]  ;;  %510 = vmatpush.bf16.msra.mxu0 %v1463_v1  ;;  %1466 = vmatpush.bf16.msra.mxu3 %v1463_v1  ;;  %v445_v6 = vld [vmem:[%s1672_s15 + $0x18] sm:$0xff]  ;;  %v447_v9 = vld [vmem:[%s1672_s15 + $0x28] sm:$0xff]  ;;  %s1591_s12 = smov 64   ;;  %s1432_s13 = sshll.u32 %s1660_s29, 7 }
  0x1e   : > { %v458_v4 = vpack.c.bf16 %v443_v3, %v442_v2  ;;  %v459_v7 = vpack.c.bf16 %v445_v6, %v444_v5  ;;  %v446_v8 = vld [vmem:[%s1672_s15 + $0x20] sm:$0xff]  ;;  %v452_v11 = vld [vmem:[%s1672_s15 + $0x50] sm:$0xff]  ;;  %v453_v12 = vld [vmem:[%s1672_s15 + $0x58] sm:$0xff]  ;;  %1512 = vset.pattern.permute.xlu1 %v2283_v27  ;;  %1514 = vset.pattern.permute.xlu0 %v2283_v27 }
  0x1f   : > { %v460_v10 = vpack.c.bf16 %v447_v9, %v446_v8  ;;  %v463_v13 = vpack.c.bf16 %v453_v12, %v452_v11  ;;  %v448_v14 = vld [vmem:[%s1672_s15 + $0x30] sm:$0xff]  ;;  %v449_v15 = vld [vmem:[%s1672_s15 + $0x38] sm:$0xff]  ;;  %v454_v16 = vld [vmem:[%s1672_s15 + $0x60] sm:$0xff]  ;;  %1513 = vset.pattern.permute.xlu2 %v2283_v27 }
  0x20   : > { %1437 = vmatmul.msk.bf16.vlgmr.msra.gmra.mxu0 %vm478_vm1, %v458_v4  ;;  %v455_v17 = vld [vmem:[%s1672_s15 + $0x68] sm:$0xff]  ;;  %v461_v18 = vpack.c.bf16 %v449_v15, %v448_v14  ;;  %v450_v20 = vld [vmem:[%s1672_s15 + $0x40] sm:$0xff]  ;;  %v456_v22 = vld [vmem:[%s1672_s15 + $0x70] sm:$0xff] }
  0x21   : > { %1442 = vmatmul.msk.bf16.vlgmr.msra.gmra.mxu3 %vm478_vm1, %v463_v13  ;;  %v464_v19 = vpack.c.bf16 %v455_v17, %v454_v16  ;;  %v451_v21 = vld [vmem:[%s1672_s15 + $0x48] sm:$0xff]  ;;  %v457_v23 = vld [vmem:[%s1672_s15 + $0x78] sm:$0xff]  ;;  %v1709_v26 = vld [vmem:[%s1677_s18] sm:$0xff] }
  0x22   : > { %v462_v24 = vpack.c.bf16 %v451_v21, %v450_v20  ;;  %v465_v25 = vpack.c.bf16 %v457_v23, %v456_v22  ;;  %vm878_vm2 = vcmp.eq.s32.totalorder %v1709_v26, 0  ;;  %v1465_v29 = vld [vmem:[%s2280_s4 + $0x8] sm:$0xff]  ;;  %v1720_v30 = vld [vmem:[%s1677_s18 + $0x18] sm:$0xff]  ;;  %v1464_v32 = vld [vmem:[%s2280_s4] sm:$0xff] }
  0x23   : > { %v894_v28 = vsel %vm878_vm2, 1, %v2283_v27  ;;  %627 = vmatpush.bf16.msra.mxu1 %v1465_v29  ;;  %1467 = vmatpush.bf16.msra.mxu2 %v1465_v29  ;;  %vm881_vm3 = vcmp.eq.s32.totalorder %v1720_v30, 0  ;;  %v1728_v33 = vld [vmem:[%s1677_s18 + $0x28] sm:$0xff]  ;;  %v1733_v35 = vld [vmem:[%s1677_s18 + $0x10] sm:$0xff]  ;;  %v1737_v36 = vld [vmem:[%s1677_s18 + $0x40] sm:$0xff] }
  0x24   : > { %911 = vperm.xlu1 %1512, %v894_v28   ;;  %v897_v31 = vsel %vm881_vm3, 1, %v2283_v27  ;;  %vm883_vm4 = vcmp.eq.s32.totalorder %v1728_v33, 0  ;;  %vm880_vm5 = vcmp.eq.s32.totalorder %v1733_v35, 0  ;;  %vm886_vm6 = vcmp.eq.s32.totalorder %v1737_v36, 0  ;;  %v1743_v39 = vld [vmem:[%s1677_s18 + $0x38] sm:$0xff]  ;;  %v1758_v45 = vld [vmem:[%s1677_s18 + $0x8] sm:$0xff] }
  0x25   : > { %v899_v34 = vsel %vm883_vm4, 1, %v2283_v27  ;;  %v896_v37 = vsel %vm880_vm5, 1, %v2283_v27  ;;  %v902_v38 = vsel %vm886_vm6, 1, %v2283_v27  ;;  %vm885_vm7 = vcmp.eq.s32.totalorder %v1743_v39, 0  ;;  %v1747_v41 = vld [vmem:[%s1677_s18 + $0x58] sm:$0xff]  ;;  %v1763_v47 = vld [vmem:[%s1677_s18 + $0x50] sm:$0xff] }
  0x26   : > { %917 = vperm.xlu0 %1514, %v896_v37   ;;  %v901_v42 = vsel %vm885_vm7, 1, %v2283_v27  ;;  %vm889_vm8 = vcmp.eq.s32.totalorder %v1747_v41, 0  ;;  %v1755_v44 = vld [vmem:[%s2279_s3] ss:$0 sm:$0xff]  ;;  %vm879_vm9 = vcmp.eq.s32.totalorder %v1758_v45, 0  ;;  %vm888_vm10 = vcmp.eq.s32.totalorder %v1763_v47, 0 }
  0x27   : > { %628 = vmatpush.bf16.msra.mxu1 %v1464_v32  ;;  %1468 = vmatpush.bf16.msra.mxu2 %v1464_v32  ;;  %v905_v43 = vsel %vm889_vm8, 1, %v2283_v27  ;;  %v895_v49 = vsel %vm879_vm9, 1, %v2283_v27  ;;  %v1768_v50 = vld [vmem:[%s1677_s18 + $0x70] sm:$0xff]  ;;  %v904_v52 = vsel %vm888_vm10, 1, %v2283_v27  ;;  %v1775_v57 = vld [vmem:[%s1677_s18 + $0x20] sm:$0xff]  ;;  %v1780_v58 = vld [vmem:[%s1677_s18 + $0x68] sm:$0xff] }
  0x28   : > { %914 = vperm.xlu2 %1513, %v895_v49   ;;  %vm892_vm11 = vcmp.eq.s32.totalorder %v1768_v50, 0  ;;  %vm882_vm13 = vcmp.eq.s32.totalorder %v1775_v57, 0  ;;  %vm891_vm14 = vcmp.eq.s32.totalorder %v1780_v58, 0  ;;  %vm1029_vm15 = vcmp.eq.s32.totalorder %v1758_v45, 1  ;;  %v1788_v63 = vld [vmem:[%s1677_s18 + $0x30] sm:$0xff]  ;;  %v1799_v9 = vld [vmem:[%s1677_s18 + $0x48] sm:$0xff] }
  0x29   : > { %v908_v53 = vsel %vm892_vm11, 1, %v2283_v27  ;;  %v898_v60 = vsel %vm882_vm13, 1, %v2283_v27  ;;  %v907_v61 = vsel %vm891_vm14, 1, %v2283_v27  ;;  %v1045_v62 = vsel %vm1029_vm15, 1, %v2283_v27  ;;  %v1809_v14 = vld [vmem:[%s1677_s18 + $0x60] sm:$0xff] }
  0x2a   : > { %vm884_vm0 = vcmp.eq.s32.totalorder %v1788_v63, 0  ;;  %vm1032_vm2 = vcmp.eq.s32.totalorder %v1775_v57, 1  ;;  %vm887_vm3 = vcmp.eq.s32.totalorder %v1799_v9, 0  ;;  %vm1031_vm4 = vcmp.eq.s32.totalorder %v1720_v30, 1 }
  0x2b   : > { %v900_v2 = vsel %vm884_vm0, 1, %v2283_v27  ;;  %v1048_v5 = vsel %vm1032_vm2, 1, %v2283_v27  ;;  %v903_v11 = vsel %vm887_vm3, 1, %v2283_v27  ;;  %v1047_v12 = vsel %vm1031_vm4, 1, %v2283_v27 }
  0x2c   : > { %920 = vperm.xlu1 %1512, %v897_v31   ;;  %vm1035_vm5 = vcmp.eq.s32.totalorder %v1743_v39, 1  ;;  %vm890_vm6 = vcmp.eq.s32.totalorder %v1809_v14, 0  ;;  %vm1034_vm7 = vcmp.eq.s32.totalorder %v1788_v63, 1  ;;  %vm1038_vm8 = vcmp.eq.s32.totalorder %v1763_v47, 1 }
  0x2d   : > { %v1051_v13 = vsel %vm1035_vm5, 1, %v2283_v27  ;;  %v906_v17 = vsel %vm890_vm6, 1, %v2283_v27  ;;  %v1054_v20 = vsel %vm1038_vm8, 1, %v2283_v27  ;;  %vm1037_vm10 = vcmp.eq.s32.totalorder %v1799_v9, 1 }
  0x2e   : > { %932 = vperm.xlu0 %1514, %v901_v42   ;;  %vm1178_vm11 = vcmp.eq.s32.totalorder %v1758_v45, 2  ;;  %v1053_v29 = vsel %vm1037_vm10, 1, %v2283_v27  ;;  %vm1030_vm13 = vcmp.eq.s32.totalorder %v1733_v35, 1  ;;  %vm1177_vm14 = vcmp.eq.s32.totalorder %v1709_v26, 2 }
  0x2f   : > { %v1194_v31 = vsel %vm1178_vm11, 1, %v2283_v27  ;;  %vm1181_vm15 = vcmp.eq.s32.totalorder %v1775_v57, 2  ;;  %v1046_v32 = vsel %vm1030_vm13, 1, %v2283_v27  ;;  %v1193_v37 = vsel %vm1177_vm14, 1, %v2283_v27 }
  0x30   : > { %1438 = vmatmul.msk.bf16.gmra.mxu0 %vm478_vm1, %v459_v7  ;;  %923 = vperm.xlu2 %1513, %v898_v60   ;;  %vm1033_vm0 = vcmp.eq.s32.totalorder %v1728_v33, 1  ;;  %vm1184_vm2 = vcmp.eq.s32.totalorder %v1743_v39, 2  ;;  %vm1036_vm3 = vcmp.eq.s32.totalorder %v1737_v36, 1  ;;  %vm1183_vm4 = vcmp.eq.s32.totalorder %v1788_v63, 2 }
  0x31   : > { %1443 = vmatmul.msk.bf16.gmra.mxu3 %vm478_vm1, %v464_v19  ;;  %v1050_v19 = vsel %vm1034_vm7, 1, %v2283_v27  ;;  %v1049_v49 = vsel %vm1033_vm0, 1, %v2283_v27  ;;  %vm1187_vm5 = vcmp.eq.s32.totalorder %v1763_v47, 2  ;;  %vm1039_vm6 = vcmp.eq.s32.totalorder %v1747_v41, 1 }
  0x32   : > { %vm1186_vm7 = vcmp.eq.s32.totalorder %v1799_v9, 2  ;;  %vm1189_vm8 = vcmp.eq.s32.totalorder %v1809_v14, 2  ;;  %v1055_v47 = vsel %vm1039_vm6, 1, %v2283_v27  ;;  %vm1040_vm10 = vcmp.eq.s32.totalorder %v1809_v14, 1 }
  0x33   : > { %v1205_v63 = vsel %vm1189_vm8, 1, %v2283_v27  ;;  %vm1042_vm11 = vcmp.eq.s32.totalorder %v1768_v50, 1  ;;  %vm1182_vm13 = vcmp.eq.s32.totalorder %v1728_v33, 2  ;;  %vm1190_vm14 = vcmp.eq.s32.totalorder %v1780_v58, 2 }
  0x34   : > { %926 = vperm.xlu1 %1512, %v899_v34   ;;  %v1198_v9 = vsel %vm1182_vm13, 1, %v2283_v27  ;;  %vm1188_vm0 = vcmp.eq.s32.totalorder %v1747_v41, 2  ;;  %vm990_vm6 = vcmask 1048064  }
  0x36   : > { %941 = vperm.xlu0 %1514, %v904_v52   ;;  %v1200_v52 = vsel %vm1184_vm2, 1, %v2283_v27 }
  0x38   : > { %929 = vperm.xlu2 %1513, %v900_v2  }
  0x3c   : > { %935 = vperm.xlu1 %1512, %v902_v38  }
  0x3e   : > { %950 = vperm.xlu0 %1514, %v907_v61  }
  0x40   : > { %1439 = vmatmul.msk.bf16.gmra.mxu0 %vm478_vm1, %v460_v10  ;;  %938 = vperm.xlu2 %1513, %v903_v11  }
  0x41   : > { %1444 = vmatmul.msk.bf16.gmra.mxu3 %vm478_vm1, %v465_v25 }
  0x44   : > { %944 = vperm.xlu1 %1512, %v905_v43  }
  0x48   : > { %947 = vperm.xlu2 %1513, %v906_v17   ;;  %v1204_v17 = vsel %vm1188_vm0, 1, %v2283_v27 }
  0x4c   : > { %953 = vperm.xlu1 %1512, %v908_v53   ;;  %v1199_v53 = vsel %vm1183_vm4, 1, %v2283_v27 }
  0x50   : > { %1440 = vmatmul.msk.bf16.gmra.mxu0 %vm478_vm1, %v461_v18 }
  0x54   : > { %1064 = vperm.xlu1 %1512, %v1045_v62   ;;  %v1202_v62 = vsel %vm1186_vm7, 1, %v2283_v27 }
  0x5c   : > { %1073 = vperm.xlu1 %1512, %v1048_v5   ;;  %v1058_v5 = vsel %vm1042_vm11, 1, %v2283_v27 }
  0x60   : > { %1441 = vmatmul.msk.bf16.gmra.mxu0 %vm478_vm1, %v462_v24  ;;  %vm1028_vm1 = vcmp.eq.s32.totalorder %v1709_v26, 1  ;;  %v1820_v24 = vld [vmem:[%s1677_s18 + $0x78] sm:$0xff] }
  0x61   : > { %v1044_v4 = vsel %vm1028_vm1, 1, %v2283_v27  ;;  %vm893_vm9 = vcmp.eq.s32.totalorder %v1820_v24, 0  ;;  %vm1180_vm1 = vcmp.eq.s32.totalorder %v1720_v30, 2  ;;  %v1052_v30 = vsel %vm1036_vm3, 1, %v2283_v27 }
  0x62   : > { %1061 = vperm.xlu0 %1514, %v1044_v4   ;;  %v909_v28 = vsel %vm893_vm9, 1, %v2283_v27  ;;  %vm1179_vm9 = vcmp.eq.s32.totalorder %v1733_v35, 2  ;;  %v1056_v4 = vsel %vm1040_vm10, 1, %v2283_v27  ;;  %vm1191_vm3 = vcmp.eq.s32.totalorder %v1768_v50, 2 }
  0x63   : > { %956 = vperm.xlu2 %1513, %v909_v28   ;;  %vm1043_vm10 = vcmp.eq.s32.totalorder %v1820_v24, 1 }
  0x64   : > { %1082 = vperm.xlu1 %1512, %v1051_v13  }
  0x6a   : > { %1070 = vperm.xlu0 %1514, %v1047_v12  }
  0x6b   : > { %1067 = vperm.xlu2 %1513, %v1046_v32  }
  0x6c   : > { %1091 = vperm.xlu1 %1512, %v1054_v20  }
  0x72   : > { %1079 = vperm.xlu0 %1514, %v1050_v19  }
  0x73   : > { %1076 = vperm.xlu2 %1513, %v1049_v49  }
  0x74   : > { %1213 = vperm.xlu1 %1512, %v1194_v31  }
  0x7a   : > { %1088 = vperm.xlu0 %1514, %v1053_v29  }
  0x7b   : > { %1085 = vperm.xlu2 %1513, %v1052_v30  }
  0x82   : > { %1210 = vperm.xlu0 %1514, %v1193_v37   ;;  %v1886_v41 = vpop.permute.xlu2 %914 }
  0x83   : > { %1094 = vperm.xlu2 %1513, %v1055_v47   ;;  %vm959_vm7 = vcmp.eq.s32.totalorder %v1886_v41, 1 }
  0x8a   : > { %v1897_v31 = vpop.permute.xlu2 %923 }
  0x98   : > { %v1888_v28 = vpop.permute.xlu0 %917 }
  0x99   : > { %vm960_vm13 = vcmp.eq.s32.totalorder %v1888_v28, 1 }
  0x9d   : > { %v512_v40 = vpop.f32.mrf.mxu0 }
  0x9e   : > { %v513_v46 = vadd.f32 %v1755_v44, %v512_v40  ;;  %v1197_v40 = vsel %vm1181_vm15, 1, %v2283_v27  ;;  %vm1185_vm15 = vcmp.eq.s32.totalorder %v1737_v36, 2 }
  0x9f   : > { %1222 = vperm.xlu1 %1512, %v1197_v40   ;;  %v1201_v13 = vsel %vm1185_vm15, 1, %v2283_v27 }
  0xa0   : > { %v552_v54 = vmax.f32 %v513_v46, 0.0 }
  0xa5   : > { %v514_v48 = vpop.f32.mrf.mxu0 }
  0xa6   : > { %v515_v51 = vadd.f32 %v1755_v44, %v514_v48  ;;  %v537_v48 = vpop.f32.mrf.mxu3 }
  0xa7   : > { %1231 = vperm.xlu1 %1512, %v1200_v52  }
  0xa8   : > { %v553_v55 = vmax.f32 %v515_v51, 0.0  ;;  %v1196_v51 = vsel %vm1180_vm1, 1, %v2283_v27  ;;  %vm1041_vm1 = vcmp.eq.s32.totalorder %v1780_v58, 1 }
  0xa9   : > { %1219 = vperm.xlu0 %1514, %v1196_v51   ;;  %v1057_v20 = vsel %vm1041_vm1, 1, %v2283_v27 }
  0xaa   : > { %v568_v56 = vpack.c.bf16 %v553_v55, %v552_v54  ;;  %v1203_v55 = vsel %vm1187_vm5, 1, %v2283_v27 }
  0xac   : > { %1453 = vmatmul.msk.bf16.vlgmr.msra.gmra.mxu1 %vm596_vm12, %v568_v56 }
  0xad   : > { %v517_v59 = vpop.f32.mrf.mxu0 }
  0xae   : > { %v518_v0 = vadd.f32 %v1755_v44, %v517_v59  ;;  %v539_v57 = vpop.f32.mrf.mxu3 }
  0xaf   : > { %1240 = vperm.xlu1 %1512, %v1203_v55   ;;  %v540_v2 = vadd.f32 %v1755_v44, %v539_v57 }
  0xb0   : > { %v554_v6 = vmax.f32 %v518_v0, 0.0 }
  0xb1   : > { %1228 = vperm.xlu0 %1514, %v1199_v53  }
  0xb5   : > { %v519_v1 = vpop.f32.mrf.mxu0 }
  0xb6   : > { %v520_v3 = vadd.f32 %v1755_v44, %v519_v1  ;;  %v542_v0 = vpop.f32.mrf.mxu3  ;;  %v538_v1 = vadd.f32 %v1755_v44, %v537_v48 }
  0xb7   : > { %1246 = vperm.xlu1 %1512, %v1205_v63   ;;  %v543_v11 = vadd.f32 %v1755_v44, %v542_v0 }
  0xb8   : > { %v555_v7 = vmax.f32 %v520_v3, 0.0  ;;  %v1195_v3 = vsel %vm1179_vm9, 1, %v2283_v27 }
  0xb9   : > { %1237 = vperm.xlu0 %1514, %v1202_v62   ;;  %1216 = vperm.xlu2 %1513, %v1195_v3  }
  0xba   : > { %v569_v8 = vpack.c.bf16 %v555_v7, %v554_v6  ;;  %v562_v6 = vmax.f32 %v538_v1, 0.0  ;;  %v563_v7 = vmax.f32 %v540_v2, 0.0 }
  0xbc   : > { %1454 = vmatmul.msk.bf16.gmra.mxu1 %vm596_vm12, %v569_v8  ;;  %v573_v35 = vpack.c.bf16 %v563_v7, %v562_v6 }
  0xbd   : > { %v522_v10 = vpop.f32.mrf.mxu0 }
  0xbe   : > { %v523_v15 = vadd.f32 %v1755_v44, %v522_v10  ;;  %v544_v8 = vpop.f32.mrf.mxu3  ;;  %v1206_v10 = vsel %vm1190_vm14, 1, %v2283_v27 }
  0xbf   : > { %1103 = vperm.xlu1 %1512, %v1058_v5   ;;  %v545_v12 = vadd.f32 %v1755_v44, %v544_v8 }
  0xc0   : > { %v556_v21 = vmax.f32 %v523_v15, 0.0  ;;  %v564_v15 = vmax.f32 %v543_v11, 0.0 }
  0xc1   : > { %1097 = vperm.xlu0 %1514, %v1056_v4   ;;  %1225 = vperm.xlu2 %1513, %v1198_v9  }
  0xc5   : > { %v524_v16 = vpop.f32.mrf.mxu0 }
  0xc6   : > { %v525_v18 = vadd.f32 %v1755_v44, %v524_v16  ;;  %v547_v14 = vpop.f32.mrf.mxu3  ;;  %v565_v16 = vmax.f32 %v545_v12, 0.0 }
  0xc7   : > { %v548_v36 = vadd.f32 %v1755_v44, %v547_v14 }
  0xc8   : > { %v557_v22 = vmax.f32 %v525_v18, 0.0  ;;  %v574_v33 = vpack.c.bf16 %v565_v16, %v564_v15 }
  0xc9   : > { %1249 = vperm.xlu0 %1514, %v1206_v10   ;;  %1234 = vperm.xlu2 %1513, %v1201_v13  }
  0xca   : > { %v570_v23 = vpack.c.bf16 %v557_v22, %v556_v21  ;;  %v566_v21 = vmax.f32 %v548_v36, 0.0 }
  0xcc   : > { %1455 = vmatmul.msk.bf16.gmra.mxu1 %vm596_vm12, %v570_v23 }
  0xcd   : > { %v527_v25 = vpop.f32.mrf.mxu0 }
  0xce   : > { %v528_v34 = vadd.f32 %v1755_v44, %v527_v25  ;;  %v549_v18 = vpop.f32.mrf.mxu3  ;;  %v1884_v25 = vpop.permute.xlu1 %911 }
  0xcf   : > { %v550_v19 = vadd.f32 %v1755_v44, %v549_v18  ;;  %vm958_vm5 = vcmp.eq.s32.totalorder %v1884_v25, 1 }
  0xd0   : > { %v558_v43 = vmax.f32 %v528_v34, 0.0  ;;  %v1902_v34 = vpop.permute.xlu0 %932 }
  0xd1   : > { %1243 = vperm.xlu2 %1513, %v1204_v17   ;;  %v567_v22 = vmax.f32 %v550_v19, 0.0 }
  0xd3   : > { %v575_v23 = vpack.c.bf16 %v567_v22, %v566_v21 }
  0xd5   : > { %v529_v38 = vpop.f32.mrf.mxu0 }
  0xd6   : > { %v530_v42 = vadd.f32 %v1755_v44, %v529_v38  ;;  %v1895_v58 = vpop.permute.xlu1 %920 }
  0xd7   : > { %vm961_vm15 = vcmp.eq.s32.totalorder %v1895_v58, 1 }
  0xd8   : > { %v559_v45 = vmax.f32 %v530_v42, 0.0 }
  0xd9   : > { %1100 = vperm.xlu2 %1513, %v1057_v20  }
  0xda   : > { %v571_v46 = vpack.c.bf16 %v559_v45, %v558_v43  ;;  %v1910_v45 = vpop.permute.xlu2 %929 }
  0xdc   : > { %1456 = vmatmul.msk.bf16.gmra.mxu1 %vm596_vm12, %v571_v46 }
  0xdd   : > { %v532_v26 = vpop.f32.mrf.mxu0 }
  0xde   : > { %v533_v39 = vadd.f32 %v1755_v44, %v532_v26  ;;  %v1905_v38 = vpop.permute.xlu1 %926  ;;  %v1913_v26 = vpop.permute.xlu0 %941 }
  0xe0   : > { %v560_v59 = vmax.f32 %v533_v39, 0.0 }
  0xe2   : > { %v1922_v55 = vpop.permute.xlu2 %938 }
  0xe5   : > { %v534_v54 = vpop.f32.mrf.mxu0 }
  0xe6   : > { %v535_v56 = vadd.f32 %v1755_v44, %v534_v54  ;;  %v1893_v44 = vld [vmem:[%s2281_s5] ss:$0 sm:$0xff]  ;;  %v1919_v30 = vpop.permute.xlu1 %935 }
  0xe8   : > { %v561_v60 = vmax.f32 %v535_v56, 0.0  ;;  %v1924_v56 = vpop.permute.xlu0 %950 }
  0xe9   : > { %2288 = vst [vmem:[#allocation2_spill] sm:$0xff] %v1924_v56 }
  0xea   : > { %v572_v61 = vpack.c.bf16 %v561_v60, %v560_v59  ;;  %v1933_v1 = vpop.permute.xlu2 %947 }
  0xeb   : > { %2289 = vst [vmem:[#allocation3_spill] sm:$0xff] %v1933_v1 }
  0xec   : > { %1457 = vmatmul.msk.bf16.vlgmr.msra.gmra.mxu2 %vm596_vm12, %v572_v61 }
  0xee   : > { %v1931_v62 = vpop.permute.xlu1 %944 }
  0xf0   : > { %v1935_v2 = vpop.permute.xlu0 %1061 }
  0xf1   : > { %vm1108_vm8 = vcmp.eq.s32.totalorder %v1935_v2, 1 }
  0xf2   : > { %v1945_v10 = vpop.permute.xlu2 %956 }
  0xf3   : > { %2291 = vst [vmem:[#allocation5_spill] sm:$0xff] %v1945_v10 }
  0xf8   : > { %v1950_v12 = vpop.permute.xlu0 %1070 }
  0xfa   : > { %v1959_v19 = vpop.permute.xlu2 %1067 }
  0xfb   : > { %vm1110_vm14 = vcmp.eq.s32.totalorder %v1959_v19, 1 }
  0xfc   : > { %1458 = vmatmul.msk.bf16.gmra.mxu2 %vm596_vm12, %v573_v35  ;;  %v1942_v35 = vpop.permute.xlu1 %953 }
  0xfd   : > { %2290 = vst [vmem:[#allocation4_spill] sm:$0xff] %v1942_v35 }
 0x100   : > { %v1962_v21 = vpop.permute.xlu0 %1079 }
 0x10c   : > { %1459 = vmatmul.msk.bf16.gmra.mxu2 %vm596_vm12, %v574_v33  ;;  %v1953_v33 = vpop.permute.xlu1 %1064 }
 0x10d   : > { %vm1109_vm9 = vcmp.eq.s32.totalorder %v1953_v33, 1 }
 0x11c   : > { %1460 = vmatmul.msk.bf16.gmra.mxu2 %vm596_vm12, %v575_v23  ;;  %vm1192_vm12 = vcmp.eq.s32.totalorder %v1820_v24, 2 }
 0x129   : > { %v630_v29 = vpop.f32.mrf.mxu1 }
 0x12a   : > { %v1900_v32 = vadd.f32 %v1893_v44, %v630_v29 }
 0x12c   : > { %v670_v37 = vmul.f32 0.5, %v1900_v32 }
 0x12e   : > { %1517 = vtanh.f32 %v670_v37 }
 0x131   : > { %v632_v40 = vpop.f32.mrf.mxu1 }
 0x132   : > { %v1908_v42 = vadd.f32 %v1893_v44, %v632_v40  ;;  %v1968_v40 = vpop.permute.xlu1 %1073 }
 0x134   : > { %v1518_v43 = vpop.eup %1517  ;;  %v671_v46 = vmul.f32 0.5, %v1908_v42 }
 0x135   : > { %v702_v48 = vmul.f32 0.5, %v1518_v43 }
 0x136   : > { %1519 = vtanh.f32 %v671_v46 }
 0x137   : > { %v718_v49 = vadd.f32 0.5, %v702_v48 }
 0x139   : > { %v635_v51 = vpop.f32.mrf.mxu1  ;;  %750 = vrot.lane.b32.xlu0 %v718_v49, %s1591_s12  ;;  %v1971_v49 = vpop.permute.xlu2 %1076 }
 0x13a   : > { %v1917_v52 = vadd.f32 %v1893_v44, %v635_v51  ;;  %v1973_v51 = vpop.permute.xlu0 %1088 }
 0x13c   : > { %v1520_v39 = vpop.eup %1519  ;;  %v672_v53 = vmul.f32 0.5, %v1917_v52 }
 0x13d   : > { %v703_v54 = vmul.f32 0.5, %v1520_v39 }
 0x13e   : > { %1521 = vtanh.f32 %v672_v53 }
 0x13f   : > { %v719_v57 = vadd.f32 0.5, %v703_v54  ;;  %v1976_v54 = vpop.permute.xlu1 %1082 }
 0x141   : > { %v637_v59 = vpop.f32.mrf.mxu1  ;;  %752 = vrot.lane.b32.xlu0 %v719_v57, %s1591_s12 }
 0x142   : > { %v1928_v60 = vadd.f32 %v1893_v44, %v637_v59 }
 0x144   : > { %v1522_v61 = vpop.eup %1521  ;;  %v673_v47 = vmul.f32 0.5, %v1928_v60 }
 0x145   : > { %v704_v63 = vmul.f32 0.5, %v1522_v61 }
 0x146   : > { %1523 = vtanh.f32 %v673_v47  ;;  %v1978_v47 = vpop.permute.xlu2 %1085 }
 0x147   : > { %v720_v0 = vadd.f32 0.5, %v704_v63 }
 0x149   : > { %v640_v3 = vpop.f32.mrf.mxu1  ;;  %754 = vrot.lane.b32.xlu1 %v720_v0, %s1591_s12  ;;  %v1983_v0 = vpop.permute.xlu0 %1210 }
 0x14a   : > { %v1939_v4 = vadd.f32 %v1893_v44, %v640_v3  ;;  %vm1257_vm1 = vcmp.eq.s32.totalorder %v1983_v0, 1 }
 0x14c   : > { %v1524_v5 = vpop.eup %1523  ;;  %v674_v6 = vmul.f32 0.5, %v1939_v4 }
 0x14d   : > { %v705_v7 = vmul.f32 0.5, %v1524_v5  ;;  %v1987_v5 = vpop.permute.xlu1 %1091 }
 0x14e   : > { %1525 = vtanh.f32 %v674_v6 }
 0x14f   : > { %v721_v8 = vadd.f32 0.5, %v705_v7 }
 0x151   : > { %v642_v9 = vpop.f32.mrf.mxu1  ;;  %756 = vrot.lane.b32.xlu1 %v721_v8, %s1591_s12 }
 0x152   : > { %v1948_v11 = vadd.f32 %v1893_v44, %v642_v9  ;;  %v1992_v9 = vpop.permute.xlu2 %1094 }
 0x154   : > { %v1526_v13 = vpop.eup %1525  ;;  %v675_v14 = vmul.f32 0.5, %v1948_v11 }
 0x155   : > { %v706_v15 = vmul.f32 0.5, %v1526_v13 }
 0x156   : > { %1527 = vtanh.f32 %v675_v14  ;;  %v1995_v14 = vpop.permute.xlu0 %1219 }
 0x157   : > { %v722_v16 = vadd.f32 0.5, %v706_v15 }
 0x159   : > { %v645_v17 = vpop.f32.mrf.mxu1  ;;  %758 = vrot.lane.b32.xlu2 %v722_v16, %s1591_s12 }
 0x15a   : > { %v1957_v18 = vadd.f32 %v1893_v44, %v645_v17 }
 0x15c   : > { %v1528_v36 = vpop.eup %1527  ;;  %v676_v20 = vmul.f32 0.5, %v1957_v18 }
 0x15d   : > { %v707_v22 = vmul.f32 0.5, %v1528_v36 }
 0x15e   : > { %1529 = vtanh.f32 %v676_v20  ;;  %v2001_v20 = vpop.permute.xlu1 %1213 }
 0x15f   : > { %v723_v23 = vadd.f32 0.5, %v707_v22  ;;  %vm1258_vm0 = vcmp.eq.s32.totalorder %v2001_v20, 1 }
 0x161   : > { %v647_v29 = vpop.f32.mrf.mxu1  ;;  %760 = vrot.lane.b32.xlu2 %v723_v23, %s1591_s12 }
 0x162   : > { %v1966_v37 = vadd.f32 %v1893_v44, %v647_v29 }
 0x164   : > { %v1530_v43 = vpop.eup %1529  ;;  %v677_v46 = vmul.f32 0.5, %v1966_v37 }
 0x165   : > { %v708_v48 = vmul.f32 0.5, %v1530_v43  ;;  %v2004_v43 = vpop.permute.xlu2 %1216 }
 0x166   : > { %1531 = vtanh.f32 %v677_v46  ;;  %v2006_v46 = vpop.permute.xlu0 %1228 }
 0x167   : > { %v724_v39 = vadd.f32 0.5, %v708_v48 }
 0x169   : > { %762 = vrot.lane.b32.xlu0 %v724_v39, %s1591_s12 }
 0x16c   : > { %v1532_v53 = vpop.eup %1531 }
 0x16d   : > { %v709_v57 = vmul.f32 0.5, %v1532_v53 }
 0x16f   : > { %v650_v59 = vpop.f32.mrf.mxu2  ;;  %v725_v61 = vadd.f32 0.5, %v709_v57 }
 0x170   : > { %v1981_v63 = vadd.f32 %v1893_v44, %v650_v59 }
 0x171   : > { %764 = vrot.lane.b32.xlu1 %v725_v61, %s1591_s12  ;;  %v2013_v61 = vpop.permute.xlu1 %1222 }
 0x172   : > { %v678_v3 = vmul.f32 0.5, %v1981_v63 }
 0x174   : > { %1533 = vtanh.f32 %v678_v3 }
 0x177   : > { %v652_v6 = vpop.f32.mrf.mxu2 }
 0x178   : > { %v1990_v7 = vadd.f32 %v1893_v44, %v652_v6 }
 0x17a   : > { %v1534_v8 = vpop.eup %1533  ;;  %v679_v13 = vmul.f32 0.5, %v1990_v7 }
 0x17b   : > { %v710_v15 = vmul.f32 0.5, %v1534_v8  ;;  %v2015_v8 = vpop.permute.xlu2 %1225 }
 0x17c   : > { %1535 = vtanh.f32 %v679_v13  ;;  %v2017_v13 = vpop.permute.xlu0 %1237 }
 0x17d   : > { %v726_v16 = vadd.f32 0.5, %v710_v15  ;;  %2292 = vst [vmem:[#allocation6_spill] sm:$0xff] %v2017_v13 }
 0x17f   : > { %v655_v17 = vpop.f32.mrf.mxu2  ;;  %766 = vrot.lane.b32.xlu2 %v726_v16, %s1591_s12 }
 0x180   : > { %v1999_v36 = vadd.f32 %v1893_v44, %v655_v17 }
 0x182   : > { %v1536_v22 = vpop.eup %1535  ;;  %v680_v23 = vmul.f32 0.5, %v1999_v36 }
 0x183   : > { %v711_v29 = vmul.f32 0.5, %v1536_v22 }
 0x184   : > { %1537 = vtanh.f32 %v680_v23 }
 0x185   : > { %v727_v48 = vadd.f32 0.5, %v711_v29  ;;  %v2024_v29 = vpop.permute.xlu1 %1231 }
 0x187   : > { %v657_v39 = vpop.f32.mrf.mxu2  ;;  %768 = vrot.lane.b32.xlu0 %v727_v48, %s1591_s12 }
 0x188   : > { %v2010_v53 = vadd.f32 %v1893_v44, %v657_v39 }
 0x18a   : > { %v1538_v57 = vpop.eup %1537  ;;  %v681_v59 = vmul.f32 0.5, %v2010_v53 }
 0x18b   : > { %v712_v3 = vmul.f32 0.5, %v1538_v57  ;;  %v2027_v57 = vpop.permute.xlu2 %1234 }
 0x18c   : > { %1539 = vtanh.f32 %v681_v59  ;;  %2293 = vst [vmem:[#allocation7_spill] sm:$0xff] %v2027_v57 }
 0x18d   : > { %v728_v6 = vadd.f32 0.5, %v712_v3  ;;  %v2032_v3 = vpop.permute.xlu0 %1097 }
 0x18e   : > { %2295 = vst [vmem:[#allocation9_spill] sm:$0xff] %v2032_v3 }
 0x18f   : > { %v660_v15 = vpop.f32.mrf.mxu2  ;;  %770 = vrot.lane.b32.xlu1 %v728_v6, %s1591_s12 }
 0x190   : > { %v2021_v16 = vadd.f32 %v1893_v44, %v660_v15 }
 0x192   : > { %v1540_v17 = vpop.eup %1539  ;;  %v682_v22 = vmul.f32 0.5, %v2021_v16 }
 0x193   : > { %v713_v23 = vmul.f32 0.5, %v1540_v17 }
 0x194   : > { %1541 = vtanh.f32 %v682_v22  ;;  %v2035_v22 = vpop.permute.xlu1 %1240 }
 0x195   : > { %v729_v48 = vadd.f32 0.5, %v713_v23  ;;  %2296 = vst [vmem:[#allocation10_spill] sm:$0xff] %v2035_v22  ;;  %v2044_v56 = vpop.permute.xlu0 %1249 }
 0x196   : > { %2299 = vst [vmem:[#allocation13_spill] sm:$0xff] %v2044_v56 }
 0x197   : > { %v662_v39 = vpop.f32.mrf.mxu2  ;;  %772 = vrot.lane.b32.xlu2 %v729_v48, %s1591_s12 }
 0x198   : > { %v2030_v59 = vadd.f32 %v1893_v44, %v662_v39  ;;  %v2041_v39 = vpop.permute.xlu2 %1243 }
 0x199   : > { %2298 = vst [vmem:[#allocation12_spill] sm:$0xff] %v2041_v39 }
 0x19a   : > { %2294 = vst [vmem:[#allocation8_spill] sm:$0xff] %v2030_v59  ;;  %v1542_v6 = vpop.eup %1541  ;;  %v683_v15 = vmul.f32 0.5, %v2030_v59  ;;  %v392_v59 = vlaneseq }
 0x19b   : > { %v714_v27 = vmul.f32 0.5, %v1542_v6 }
 0x19c   : > { %1543 = vtanh.f32 %v683_v15  ;;  %v2048_v15 = vshrl.u32 %v392_v59, 7  ;;  %v2055_v39 = vpop.permute.xlu1 %1246 }
 0x19d   : > { %v730_v17 = vadd.f32 0.5, %v714_v27  ;;  %2301 = vst [vmem:[#allocation15_spill] sm:$0xff] %v2055_v39 }
 0x19e   : > { %v394_v59 = vadd.s32 8, %v2048_v15  ;;  %v396_v33 = vadd.s32 24, %v2048_v15 }
 0x19f   : > { %v665_v23 = vpop.f32.mrf.mxu2  ;;  %774 = vrot.lane.b32.xlu0 %v730_v17, %s1591_s12 }
 0x1a0   : > { %v2039_v48 = vadd.f32 %v1893_v44, %v665_v23  ;;  %v2053_v23 = vstv %s1432_s13 }
 0x1a2   : > { %2297 = vst [vmem:[#allocation11_spill] sm:$0xff] %v2039_v48  ;;  %v1544_v10 = vpop.eup %1543  ;;  %v684_v3 = vmul.f32 0.5, %v2039_v48 }
 0x1a3   : > { %v715_v35 = vmul.f32 0.5, %v1544_v10 }
 0x1a4   : > { %1545 = vtanh.f32 %v684_v3  ;;  %v2069_v48 = vpop.permute.xlu1 %1103 }
 0x1a5   : > { %v731_v6 = vadd.f32 0.5, %v715_v35  ;;  %v410_v35 = vadd.s32 %v2053_v23, %v2048_v15 }
 0x1a7   : > { %v667_v27 = vpop.f32.mrf.mxu2  ;;  %776 = vrot.lane.b32.xlu1 %v731_v6, %s1591_s12  ;;  %v2062_v6 = vpop.permute.xlu2 %1100  ;;  %vm426_vm2 = vcmp.lt.s32.totalorder %v410_v35, 300 }
 0x1a8   : > { %v2051_v17 = vadd.f32 %v1893_v44, %v667_v27  ;;  %2302 = vst [vmem:[#allocation16_spill] sm:$0xff] %v2062_v6  ;;  %v2303_v44 = vmov 0   ;;  %v395_v6 = vadd.s32 16, %v2048_v15 }
 0x1a9   : > { %v1208_v27 = vsel %vm1192_vm12, 1, %v2303_v44  ;;  %vm1259_vm12 = vcmp.eq.s32.totalorder %v2004_v43, 1 }
 0x1aa   : > { %2300 = vst [vmem:[#allocation14_spill] sm:$0xff] %v2051_v17  ;;  %v1546_v56 = vpop.eup %1545  ;;  %v685_v10 = vmul.f32 0.5, %v2051_v17  ;;  %v411_v17 = vadd.s32 %v2053_v23, %v394_v59  ;;  %v412_v25 = vadd.s32 %v2053_v23, %v395_v6 }
 0x1ab   : > { %v751_v3 = vpop.permute.xlu0 %750  ;;  %v716_v22 = vmul.f32 0.5, %v1546_v56 }
 0x1ac   : > { %1547 = vtanh.f32 %v685_v10  ;;  %v798_v39 = vmul.f32 %v751_v3, %v1900_v32  ;;  %vm427_vm4 = vcmp.lt.s32.totalorder %v411_v17, 300  ;;  %vm428_vm11 = vcmp.lt.s32.totalorder %v412_v25, 300 }
 0x1ad   : > { %v732_v13 = vadd.f32 0.5, %v716_v22 }
 0x1ae   : > { %v846_v56 = vsel %vm426_vm2, %v798_v39, 0.0 }
 0x1af   : > { %778 = vrot.lane.b32.xlu2 %v732_v13, %s1591_s12  ;;  %1255 = vperm.xlu1 %1512, %v1208_v27   ;;  %v1207_v13 = vsel %vm1191_vm3, 1, %v2303_v44  ;;  %v974_v3 = vsel %vm958_vm5, %v846_v56, 0.0  ;;  %v1124_v39 = vsel %vm1108_vm8, %v846_v56, 0.0  ;;  %v1273_v28 = vsel %vm1257_vm1, %v846_v56, 0.0 }
 0x1b0   : > { %v1140_v2 = vsel %vm990_vm6, %v1124_v39, 0.0  ;;  %vm963_vm3 = vcmp.eq.s32.totalorder %v1905_v38, 1  ;;  %vm962_vm5 = vcmp.eq.s32.totalorder %v1897_v31, 1  ;;  %vm1112_vm8 = vcmp.eq.s32.totalorder %v1968_v40, 1 }
 0x1b2   : > { %v1548_v57 = vpop.eup %1547 }
 0x1b3   : > { %v753_v1 = vpop.permute.xlu0 %752  ;;  %v717_v10 = vmul.f32 0.5, %v1548_v57  ;;  %v759_v32 = vpop.permute.xlu2 %758 }
 0x1b4   : > { %v799_v22 = vmul.f32 %v753_v1, %v1908_v42  ;;  %v991_v42 = vsel %vm990_vm6, %v974_v3, 0.0  ;;  %v397_v1 = vadd.s32 32, %v2048_v15  ;;  %v802_v25 = vmul.f32 %v759_v32, %v1939_v4 }
 0x1b5   : > { %v733_v35 = vadd.f32 0.5, %v717_v10  ;;  %v398_v10 = vadd.s32 40, %v2048_v15 }
 0x1b6   : > { %v847_v50 = vsel %vm427_vm4, %v799_v22, 0.0 }
 0x1b7   : > { %v975_v17 = vsel %vm959_vm7, %v847_v50, 0.0  ;;  %1252 = vperm.xlu2 %1513, %v1207_v13   ;;  %780 = vrot.lane.b32.xlu0 %v733_v35, %s1591_s12  ;;  %v1125_v41 = vsel %vm1109_vm9, %v847_v50, 0.0  ;;  %v414_v13 = vadd.s32 %v2053_v23, %v397_v1  ;;  %v1059_v35 = vsel %vm1043_vm10, 1, %v2303_v44 }
 0x1b8   : > { %v992_v57 = vsel %vm990_vm6, %v975_v17, 0.0  ;;  %v1141_v27 = vsel %vm990_vm6, %v1125_v41, 0.0  ;;  %v415_v39 = vadd.s32 %v2053_v23, %v398_v10  ;;  %v413_v44 = vadd.s32 %v2053_v23, %v396_v33 }
 0x1b9   : > { %v993_v59 = vadd.f32 %v992_v57, %v991_v42  ;;  %v1142_v22 = vadd.f32 %v1141_v27, %v1140_v2  ;;  %v1274_v42 = vsel %vm1258_vm0, %v847_v50, 0.0  ;;  %vm430_vm2 = vcmp.lt.s32.totalorder %v414_v13, 300 }
 0x1ba   : > { %v1290_v4 = vsel %vm990_vm6, %v1274_v42, 0.0  ;;  %vm431_vm4 = vcmp.lt.s32.totalorder %v415_v39, 300  ;;  %v2108_v43 = vsel %vm430_vm2, %v802_v25, 0.0  ;;  %vm429_vm7 = vcmp.lt.s32.totalorder %v413_v44, 300 }
 0x1bb   : > { %v755_v6 = vpop.permute.xlu1 %754  ;;  %v761_v24 = vpop.permute.xlu2 %760  ;;  %vm1111_vm9 = vcmp.eq.s32.totalorder %v1950_v12, 1  ;;  %vm1113_vm10 = vcmp.eq.s32.totalorder %v1971_v49, 1  ;;  %v978_v31 = vsel %vm962_vm5, %v2108_v43, 0.0  ;;  %v1128_v10 = vsel %vm1112_vm8, %v2108_v43, 0.0 }
 0x1bc   : > { %v800_v3 = vmul.f32 %v755_v6, %v1917_v52  ;;  %v803_v20 = vmul.f32 %v761_v24, %v1948_v11  ;;  %v1289_v11 = vsel %vm990_vm6, %v1273_v28, 0.0  ;;  %v998_v58 = vsel %vm990_vm6, %v978_v31, 0.0 }
 0x1bd   : > { %v1291_v2 = vadd.f32 %v1290_v4, %v1289_v11  ;;  %vm965_vm2 = vcmp.eq.s32.totalorder %v1902_v34, 1  ;;  %vm1117_vm8 = vcmp.eq.s32.totalorder %v1973_v51, 1 }
 0x1be   : > { %v848_v17 = vsel %vm428_vm11, %v800_v3, 0.0  ;;  %v2116_v27 = vsel %vm431_vm4, %v803_v20, 0.0  ;;  %vm1260_vm11 = vcmp.eq.s32.totalorder %v1995_v14, 1  ;;  %vm1116_vm4 = vcmp.eq.s32.totalorder %v1978_v47, 1 }
 0x1bf   : > { %v976_v52 = vsel %vm960_vm13, %v848_v17, 0.0  ;;  %1106 = vperm.xlu0 %1514, %v1059_v35   ;;  %v1126_v57 = vsel %vm1110_vm14, %v848_v17, 0.0  ;;  %v1275_v41 = vsel %vm1259_vm12, %v848_v17, 0.0  ;;  %v979_v12 = vsel %vm963_vm3, %v2116_v27, 0.0 }
 0x1c0   : > { %v994_v1 = vsel %vm990_vm6, %v976_v52, 0.0  ;;  %v1143_v32 = vsel %vm990_vm6, %v1126_v57, 0.0  ;;  %v1292_v19 = vsel %vm990_vm6, %v1275_v41, 0.0  ;;  %v1129_v3 = vsel %vm1113_vm10, %v2116_v27, 0.0 }
 0x1c1   : > { %v995_v0 = vadd.f32 %v994_v1, %v993_v59  ;;  %v1144_v56 = vadd.f32 %v1143_v32, %v1142_v22  ;;  %v1293_v22 = vadd.f32 %v1292_v19, %v1291_v2  ;;  %v1147_v17 = vsel %vm990_vm6, %v1128_v10, 0.0 }
 0x1c2   : > { %v1000_v38 = vsel %vm990_vm6, %v979_v12, 0.0  ;;  %v1149_v52 = vsel %vm990_vm6, %v1129_v3, 0.0  ;;  %v399_v1 = vadd.s32 48, %v2048_v15  ;;  %v400_v41 = vadd.s32 56, %v2048_v15 }
 0x1c3   : > { %v757_v50 = vpop.permute.xlu1 %756  ;;  %vm964_vm14 = vcmp.eq.s32.totalorder %v1910_v45, 1  ;;  %vm966_vm12 = vcmp.eq.s32.totalorder %v1919_v30, 1  ;;  %vm1115_vm3 = vcmp.eq.s32.totalorder %v1976_v54, 1  ;;  %v402_v3 = vadd.s32 72, %v2048_v15 }
 0x1c4   : > { %v801_v59 = vmul.f32 %v757_v50, %v1928_v60  ;;  %v416_v20 = vadd.s32 %v2053_v23, %v399_v1 }
 0x1c6   : > { %v849_v40 = vsel %vm429_vm7, %v801_v59, 0.0  ;;  %vm432_vm13 = vcmp.lt.s32.totalorder %v416_v20, 300  ;;  %v417_v59 = vadd.s32 %v2053_v23, %v400_v41  ;;  %vm967_vm7 = vcmp.eq.s32.totalorder %v1922_v55, 1 }
 0x1c7   : > { %v977_v6 = vsel %vm961_vm15, %v849_v40, 0.0  ;;  %v1127_v33 = vsel %vm1111_vm9, %v849_v40, 0.0  ;;  %v1276_v60 = vsel %vm1260_vm11, %v849_v40, 0.0  ;;  %vm1114_vm15 = vcmp.eq.s32.totalorder %v1962_v21, 1 }
 0x1c8   : > { %v996_v49 = vsel %vm990_vm6, %v977_v6, 0.0  ;;  %v1145_v13 = vsel %vm990_vm6, %v1127_v33, 0.0  ;;  %v1294_v14 = vsel %vm990_vm6, %v1276_v60, 0.0  ;;  %vm433_vm1 = vcmp.lt.s32.totalorder %v417_v59, 300 }
 0x1c9   : > { %v997_v35 = vadd.f32 %v996_v49, %v995_v0  ;;  %v1146_v24 = vadd.f32 %v1145_v13, %v1144_v56  ;;  %v2130_v39 = vadd.f32 %v1294_v14, %v1293_v22  ;;  %v401_v0 = vadd.s32 64, %v2048_v15 }
 0x1ca   : > { %vm969_vm11 = vcmp.eq.s32.totalorder %v1931_v62, 1 }
 0x1cb   : > { %v999_v25 = vadd.f32 %v998_v58, %v997_v35  ;;  %v1148_v42 = vadd.f32 %v1147_v17, %v1146_v24  ;;  %v418_v56 = vadd.s32 %v2053_v23, %v401_v0  ;;  %v419_v35 = vadd.s32 %v2053_v23, %v402_v3  ;;  %v2306_v3 = vld [vmem:[#allocation7_spill] sm:$0xff] }
 0x1cc   : > { %v404_v24 = vadd.s32 88, %v2048_v15  ;;  %v403_v17 = vadd.s32 80, %v2048_v15 }
 0x1cd   : > { %v1001_v44 = vadd.f32 %v1000_v38, %v999_v25  ;;  %v1150_v28 = vadd.f32 %v1149_v52, %v1148_v42  ;;  %vm434_vm0 = vcmp.lt.s32.totalorder %v418_v56, 300  ;;  %vm435_vm5 = vcmp.lt.s32.totalorder %v419_v35, 300  ;;  %v2307_v35 = vld [vmem:[#allocation6_spill] sm:$0xff] }
 0x1ce   : > { %v421_v38 = vadd.s32 %v2053_v23, %v404_v24  ;;  %v420_v1 = vadd.s32 %v2053_v23, %v403_v17 }
 0x1d0   : > { %vm437_vm9 = vcmp.lt.s32.totalorder %v421_v38, 300  ;;  %vm436_vm10 = vcmp.lt.s32.totalorder %v420_v1, 300  ;;  %v2310_v1 = vld [vmem:[#allocation4_spill] sm:$0xff] }
 0x1d9   : > { %v767_v32 = vpop.permute.xlu2 %766 }
 0x1da   : > { %v806_v2 = vmul.f32 %v767_v32, %v1981_v63 }
 0x1db   : > { %v763_v57 = vpop.permute.xlu0 %762 }
 0x1dc   : > { %v804_v4 = vmul.f32 %v763_v57, %v1957_v18  ;;  %v2152_v21 = vsel %vm434_vm0, %v806_v2, 0.0  ;;  %vm1261_vm0 = vcmp.eq.s32.totalorder %v2013_v61, 1  ;;  %v406_v61 = vadd.s32 104, %v2048_v15 }
 0x1dd   : > { %v982_v6 = vsel %vm966_vm12, %v2152_v21, 0.0  ;;  %v1132_v33 = vsel %vm1116_vm4, %v2152_v21, 0.0  ;;  %vm1263_vm12 = vcmp.eq.s32.totalorder %v2006_v46, 1 }
 0x1de   : > { %v2144_v50 = vsel %vm432_vm13, %v804_v4, 0.0  ;;  %v1006_v54 = vsel %vm990_vm6, %v982_v6, 0.0  ;;  %v1155_v47 = vsel %vm990_vm6, %v1132_v33, 0.0  ;;  %vm968_vm13 = vcmp.eq.s32.totalorder %v1913_v26, 1 }
 0x1df   : > { %v980_v11 = vsel %vm964_vm14, %v2144_v50, 0.0  ;;  %v1130_v19 = vsel %vm1114_vm15, %v2144_v50, 0.0  ;;  %vm1118_vm14 = vcmp.eq.s32.totalorder %v1987_v5, 1  ;;  %vm1119_vm15 = vcmp.eq.s32.totalorder %v1992_v9, 1 }
 0x1e0   : > { %v1002_v31 = vsel %vm990_vm6, %v980_v11, 0.0  ;;  %v1151_v18 = vsel %vm990_vm6, %v1130_v19, 0.0  ;;  %v405_v5 = vadd.s32 96, %v2048_v15 }
 0x1e1   : > { %v1003_v10 = vadd.f32 %v1002_v31, %v1001_v44  ;;  %v1152_v40 = vadd.f32 %v1151_v18, %v1150_v28 }
 0x1e3   : > { %v765_v45 = vpop.permute.xlu1 %764 }
 0x1e4   : > { %v805_v22 = vmul.f32 %v765_v45, %v1966_v37  ;;  %v407_v45 = vadd.s32 112, %v2048_v15 }
 0x1e6   : > { %v2159_v63 = vsel %vm433_vm1, %v805_v22, 0.0  ;;  %vm1262_vm1 = vcmp.eq.s32.totalorder %v2015_v8, 1  ;;  %v424_v46 = vadd.s32 %v2053_v23, %v407_v45 }
 0x1e7   : > { %v981_v60 = vsel %vm965_vm2, %v2159_v63, 0.0  ;;  %v1131_v12 = vsel %vm1115_vm3, %v2159_v63, 0.0  ;;  %v1278_v6 = vsel %vm1262_vm1, %v2116_v27, 0.0  ;;  %vm1264_vm3 = vcmp.eq.s32.totalorder %v2024_v29, 1 }
 0x1e8   : > { %v1004_v37 = vsel %vm990_vm6, %v981_v60, 0.0  ;;  %v1153_v30 = vsel %vm990_vm6, %v1131_v12, 0.0  ;;  %v1279_v60 = vsel %vm1263_vm12, %v2144_v50, 0.0  ;;  %v1298_v27 = vsel %vm990_vm6, %v1278_v6, 0.0 }
 0x1e9   : > { %v1005_v49 = vadd.f32 %v1004_v37, %v1003_v10  ;;  %v1154_v34 = vadd.f32 %v1153_v30, %v1152_v40  ;;  %v1277_v10 = vsel %vm1261_vm0, %v2108_v43, 0.0  ;;  %v422_v40 = vadd.s32 %v2053_v23, %v405_v5  ;;  %v2304_v30 = vld [vmem:[#allocation3_spill] sm:$0xff]  ;;  %v2314_v5 = vld [vmem:[#allocation13_spill] sm:$0xff] }
 0x1ea   : > { %v1296_v22 = vsel %vm990_vm6, %v1277_v10, 0.0  ;;  %v1280_v43 = vsel %vm1264_vm3, %v2159_v63, 0.0  ;;  %vm970_vm4 = vcmp.eq.s32.totalorder %v2304_v30, 1  ;;  %vm1270_vm0 = vcmp.eq.s32.totalorder %v2314_v5, 1 }
 0x1eb   : > { %v1007_v13 = vadd.f32 %v1006_v54, %v1005_v49  ;;  %v1156_v14 = vadd.f32 %v1155_v47, %v1154_v34  ;;  %v1297_v33 = vadd.f32 %v1296_v22, %v2130_v39  ;;  %vm438_vm2 = vcmp.lt.s32.totalorder %v422_v40, 300  ;;  %v2305_v47 = vld [vmem:[#allocation11_spill] sm:$0xff] }
 0x1ec   : > { %v1300_v39 = vsel %vm990_vm6, %v1279_v60, 0.0  ;;  %v423_v54 = vadd.s32 %v2053_v23, %v406_v61  ;;  %v1302_v29 = vsel %vm990_vm6, %v1280_v43, 0.0 }
 0x1ed   : > { %v1299_v49 = vadd.f32 %v1298_v27, %v1297_v33  ;;  %v2315_v33 = vld [vmem:[#allocation9_spill] sm:$0xff]  ;;  %v2317_v27 = vld [vmem:[#allocation14_spill] sm:$0xff] }
 0x1ee   : > { %vm1120_vm1 = vcmp.eq.s32.totalorder %v2315_v33, 1 }
 0x1f1   : > { %v773_v42 = vpop.permute.xlu2 %772 }
 0x1f2   : > { %v809_v20 = vmul.f32 %v773_v42, %v2010_v53  ;;  %v2308_v42 = vld [vmem:[#allocation10_spill] sm:$0xff] }
 0x1f4   : > { %v2185_v51 = vsel %vm437_vm9, %v809_v20, 0.0  ;;  %vm439_vm9 = vcmp.lt.s32.totalorder %v423_v54, 300 }
 0x1f5   : > { %v985_v32 = vsel %vm969_vm11, %v2185_v51, 0.0  ;;  %v1135_v56 = vsel %vm1119_vm15, %v2185_v51, 0.0  ;;  %vm972_vm11 = vcmp.eq.s32.totalorder %v2310_v1, 1 }
 0x1f6   : > { %v1012_v62 = vsel %vm990_vm6, %v985_v32, 0.0  ;;  %v1161_v26 = vsel %vm990_vm6, %v1135_v56, 0.0  ;;  %v2312_v56 = vld [vmem:[#allocation12_spill] sm:$0xff] }
 0x1f9   : > { %v769_v58 = vpop.permute.xlu0 %768 }
 0x1fa   : > { %v807_v25 = vmul.f32 %v769_v58, %v1990_v7 }
 0x1fc   : > { %v2177_v52 = vsel %vm435_vm5, %v807_v25, 0.0  ;;  %vm440_vm5 = vcmp.lt.s32.totalorder %v424_v46, 300 }
 0x1fd   : > { %v983_v44 = vsel %vm967_vm7, %v2177_v52, 0.0  ;;  %v1133_v28 = vsel %vm1117_vm8, %v2177_v52, 0.0  ;;  %vm1265_vm7 = vcmp.eq.s32.totalorder %v2306_v3, 1  ;;  %vm1266_vm8 = vcmp.eq.s32.totalorder %v2307_v35, 1 }
 0x1fe   : > { %v1008_v0 = vsel %vm990_vm6, %v983_v44, 0.0  ;;  %v1157_v7 = vsel %vm990_vm6, %v1133_v28, 0.0  ;;  %v1281_v24 = vsel %vm1265_vm7, %v2152_v21, 0.0  ;;  %v1282_v17 = vsel %vm1266_vm8, %v2177_v52, 0.0  ;;  %v2309_v44 = vld [vmem:[#allocation8_spill] sm:$0xff] }
 0x1ff   : > { %v1009_v57 = vadd.f32 %v1008_v0, %v1007_v13  ;;  %v1158_v41 = vadd.f32 %v1157_v7, %v1156_v14  ;;  %v1301_v13 = vadd.f32 %v1300_v39, %v1299_v49  ;;  %v2311_v0 = vld [vmem:[#allocation2_spill] sm:$0xff]  ;;  %v1304_v7 = vsel %vm990_vm6, %v1281_v24, 0.0 }
 0x200   : > { %vm1122_vm7 = vcmp.eq.s32.totalorder %v2069_v48, 1 }
 0x201   : > { %v771_v55 = vpop.permute.xlu1 %770  ;;  %v1303_v58 = vadd.f32 %v1302_v29, %v1301_v13 }
 0x202   : > { %v808_v4 = vmul.f32 %v771_v55, %v1999_v36 }
 0x204   : > { %v856_v53 = vsel %vm436_vm10, %v808_v4, 0.0  ;;  %vm1267_vm10 = vcmp.eq.s32.totalorder %v2308_v42, 1 }
 0x205   : > { %v984_v11 = vsel %vm968_vm13, %v856_v53, 0.0  ;;  %v1134_v19 = vsel %vm1118_vm14, %v856_v53, 0.0  ;;  %v1283_v20 = vsel %vm1267_vm10, %v856_v53, 0.0  ;;  %vm971_vm13 = vcmp.eq.s32.totalorder %v2311_v0, 1 }
 0x206   : > { %v1010_v59 = vsel %vm990_vm6, %v984_v11, 0.0  ;;  %v1159_v2 = vsel %vm990_vm6, %v1134_v19, 0.0  ;;  %v1308_v4 = vsel %vm990_vm6, %v1283_v20, 0.0  ;;  %vm1268_vm14 = vcmp.eq.s32.totalorder %v2312_v56, 1 }
 0x207   : > { %v1011_v36 = vadd.f32 %v1010_v59, %v1009_v57  ;;  %v1160_v31 = vadd.f32 %v1159_v2, %v1158_v41  ;;  %v1306_v57 = vsel %vm990_vm6, %v1282_v17, 0.0  ;;  %v1305_v41 = vadd.f32 %v1304_v7, %v1303_v58  ;;  %v2313_v59 = vld [vmem:[#allocation15_spill] sm:$0xff] }
 0x208   : > { %vm1269_vm15 = vcmp.eq.s32.totalorder %v2313_v59, 1  ;;  %v1284_v53 = vsel %vm1268_vm14, %v2185_v51, 0.0  ;;  %vm1328_vm10 = vcmask 1041408  }
 0x209   : > { %v1013_v9 = vadd.f32 %v1012_v62, %v1011_v36  ;;  %v2199_v18 = vadd.f32 %v1161_v26, %v1160_v31  ;;  %v779_v37 = vpop.permute.xlu2 %778  ;;  %v1307_v11 = vadd.f32 %v1306_v57, %v1305_v41  ;;  %v408_v62 = vadd.s32 120, %v2048_v15  ;;  %v2316_v15 = vld [vmem:[#allocation16_spill] sm:$0xff] }
 0x20a   : > { %v1310_v40 = vsel %vm990_vm6, %v1284_v53, 0.0 }
 0x20b   : > { %v1309_v36 = vadd.f32 %v1308_v4, %v1307_v11  ;;  %v425_v6 = vadd.s32 %v2053_v23, %v408_v62  ;;  %v2318_v23 = vld [vmem:[#allocation5_spill] sm:$0xff] }
 0x20d   : > { %v1311_v22 = vadd.f32 %v1310_v40, %v1309_v36  ;;  %vm441_vm3 = vcmp.lt.s32.totalorder %v425_v6, 300  ;;  %v1330_v36 = vld [vmem:[%s1667_s11] sm:$0x7] }
 0x211   : > { %v775_v12 = vpop.permute.xlu0 %774 }
 0x212   : > { %v810_v8 = vmul.f32 %v775_v12, %v2021_v16  ;;  %v812_v16 = vmul.f32 %v779_v37, %v2305_v47 }
 0x214   : > { %v858_v50 = vsel %vm438_vm2, %v810_v8, 0.0  ;;  %v860_v38 = vsel %vm440_vm5, %v812_v16, 0.0  ;;  %vm1121_vm2 = vcmp.eq.s32.totalorder %v2316_v15, 1 }
 0x215   : > { %v986_v34 = vsel %vm970_vm4, %v858_v50, 0.0  ;;  %v988_v55 = vsel %vm972_vm11, %v860_v38, 0.0  ;;  %v1285_v31 = vsel %vm1269_vm15, %v858_v50, 0.0  ;;  %v1136_v60 = vsel %vm1120_vm1, %v858_v50, 0.0 }
 0x216   : > { %v1014_v63 = vsel %vm990_vm6, %v986_v34, 0.0  ;;  %v1018_v2 = vsel %vm990_vm6, %v988_v55, 0.0  ;;  %v1312_v45 = vsel %vm990_vm6, %v1285_v31, 0.0  ;;  %v1163_v30 = vsel %vm990_vm6, %v1136_v60, 0.0 }
 0x217   : > { %v1015_v14 = vadd.f32 %v1014_v63, %v1013_v9  ;;  %v1253_v9 = vpop.permute.xlu2 %1252  ;;  %v1313_v12 = vadd.f32 %v1312_v45, %v1311_v22  ;;  %vm973_vm4 = vcmp.eq.s32.totalorder %v2318_v23, 1  ;;  %v1164_v54 = vadd.f32 %v1163_v30, %v2199_v18 }
 0x218   : > { %vm1271_vm12 = vcmp.eq.s32.totalorder %v1253_v9, 1 }
 0x219   : > { %v777_v25 = vpop.permute.xlu1 %776  ;;  %v1287_v61 = vsel %vm1271_vm12, %v860_v38, 0.0 }
 0x21a   : > { %v811_v28 = vmul.f32 %v777_v25, %v2309_v44  ;;  %v1316_v49 = vsel %vm990_vm6, %v1287_v61, 0.0 }
 0x21c   : > { %v859_v21 = vsel %vm439_vm9, %v811_v28, 0.0  ;;  %vm1326_vm9 = vcmask 1040384  }
 0x21d   : > { %v987_v52 = vsel %vm971_vm13, %v859_v21, 0.0  ;;  %v1286_v10 = vsel %vm1270_vm0, %v859_v21, 0.0  ;;  %v1137_v8 = vsel %vm1121_vm2, %v859_v21, 0.0 }
 0x21e   : > { %v1016_v32 = vsel %vm990_vm6, %v987_v52, 0.0  ;;  %v1314_v51 = vsel %vm990_vm6, %v1286_v10, 0.0  ;;  %v1165_v34 = vsel %vm990_vm6, %v1137_v8, 0.0 }
 0x21f   : > { %v1017_v19 = vadd.f32 %v1016_v32, %v1015_v14  ;;  %v1315_v43 = vadd.f32 %v1314_v51, %v1313_v12  ;;  %v1138_v14 = vsel %vm1122_vm7, %v860_v38, 0.0  ;;  %v1166_v24 = vadd.f32 %v1165_v34, %v1164_v54 }
 0x220   : > { %v1167_v42 = vsel %vm990_vm6, %v1138_v14, 0.0 }
 0x221   : > { %v1019_v26 = vadd.f32 %v1018_v2, %v1017_v19  ;;  %v1256_v37 = vpop.permute.xlu1 %1255  ;;  %v1317_v16 = vadd.f32 %v1316_v49, %v1315_v43  ;;  %v1168_v1 = vadd.f32 %v1167_v42, %v1166_v24 }
 0x222   : > { %vm1272_vm5 = vcmp.eq.s32.totalorder %v1256_v37, 1 }
 0x229   : > { %v781_v46 = vpop.permute.xlu0 %780 }
 0x22a   : > { %v813_v39 = vmul.f32 %v781_v46, %v2317_v27 }
 0x22c   : > { %v861_v50 = vsel %vm441_vm3, %v813_v39, 0.0 }
 0x22d   : > { %v989_v29 = vsel %vm973_vm4, %v861_v50, 0.0  ;;  %v1288_v47 = vsel %vm1272_vm5, %v861_v50, 0.0 }
 0x22e   : > { %v1020_v63 = vsel %vm990_vm6, %v989_v29, 0.0  ;;  %v1318_v13 = vsel %vm990_vm6, %v1288_v47, 0.0 }
 0x22f   : > { %v1021_v3 = vadd.f32 %v1020_v63, %v1019_v26  ;;  %v1319_v35 = vadd.f32 %v1318_v13, %v1317_v16 }
 0x231   : > { %v1022_v58 = vrot.slane %v1021_v3, 4  ;;  %v1320_v17 = vrot.slane %v1319_v35, 4  ;;  %v1107_v25 = vpop.permute.xlu0 %1106 }
 0x232   : > { %vm1123_vm8 = vcmp.eq.s32.totalorder %v1107_v25, 1 }
 0x233   : > { %v1023_v18 = vadd.f32 %v1022_v58, %v1021_v3  ;;  %v1321_v44 = vadd.f32 %v1320_v17, %v1319_v35  ;;  %v1139_v28 = vsel %vm1123_vm8, %v861_v50, 0.0 }
 0x234   : > { %v1169_v48 = vsel %vm990_vm6, %v1139_v28, 0.0  ;;  %vm1336_vm6 = vcmask 518144  }
 0x235   : > { %v1024_v20 = vrot.slane %v1023_v18, 2  ;;  %v1170_v0 = vadd.f32 %v1169_v48, %v1168_v1  ;;  %v1322_v7 = vrot.slane %v1321_v44, 2 }
 0x237   : > { %v1171_v57 = vrot.slane %v1170_v0, 4  ;;  %v1025_v21 = vadd.f32 %v1024_v20, %v1023_v18  ;;  %v1323_v41 = vadd.f32 %v1322_v7, %v1321_v44 }
 0x239   : > { %v1172_v38 = vadd.f32 %v1171_v57, %v1170_v0  ;;  %v1026_v4 = vrot.slane %v1025_v21, 1  ;;  %v1324_v32 = vrot.slane %v1323_v41, 1 }
 0x23b   : > { %v1173_v55 = vrot.slane %v1172_v38, 2  ;;  %v1027_v11 = vadd.f32 %v1026_v4, %v1025_v21  ;;  %v1325_v59 = vadd.f32 %v1324_v32, %v1323_v41 }
 0x23d   : > { %v1174_v52 = vadd.f32 %v1173_v55, %v1172_v38 }
 0x23f   : > { %v1175_v56 = vrot.slane %v1174_v52, 1 }
 0x241   : > { %v1176_v19 = vadd.f32 %v1175_v56, %v1174_v52 }
 0x243   : > { %v1327_v53 = vsel %vm1326_vm9, %v1027_v11, %v1176_v19 }
 0x244   : > { %v1329_v2 = vsel %vm1328_vm10, %v1327_v53, %v1325_v59 }
 0x245   : > { %1332 = vrot.lane.b32.xlu2 %v1329_v2, %s1591_s12 }
 0x29f   : > { %v1333_v31 = vpop.permute.xlu2 %1332 }
 0x2a0   : > { %v1335_v62 = vadd.f32 %v1333_v31, %v1330_v36 }
 0x2a2   : > { %1337 = vst.msk [vmem:[%s1667_s11] sm:$0x7] %vm1336_vm6, %v1335_v62 }
 0x2a3 PF: > { %s16_s25 = sadd.s32 1, %s1587_s25   ;;  %s2319_s21 = smov %s1579_s23 }
 0x2a4   : > { %p13_p9 = scmp.ge.s32.totalorder %s16_s25, 6   ;;  %s2320_s22 = smov %s1583_s24 }
 0x2a5   : > { %s2321_s23 = smov %s2324_s26  ;;  %s2322_s24 = smov %s2328_s27 }
 0x2a6   :  { %15 = sbr.rel (!%p13_p9) target bundleno = 3 (0x3), region = 81 }

</bundles_post_ra>
